<compile_context>
chip_gen: v5e
topology: v5e:2x2
jax: 0.10.0
libtpu: 0.0.40
codegen_flags: <defaults>
</compile_context>

<pallas_src>
import functools

import numpy as np
import jax
import jax.numpy as jnp
from jax import lax
from jax.experimental import pallas as pl
from jax.experimental.pallas import tpu as pltpu

N_PARTS = 9
N_DOMAINS = (N_PARTS + 1) // 2  # 5


# --------------------------------------------------------------------------- #
# Fused Model.forward + CORAL loss kernel (gridded accumulator over row tiles)
# --------------------------------------------------------------------------- #
def fused_kernel(x_ref, *refs, n_blocks, n_domains, n_total):
    nd = n_domains
    p_end = 2 * n_blocks + 2
    param_refs = refs[:p_end]
    (ys_ref, folds_ref,
     preds_ref, feats_ref, loss_ref,
     gram_acc, sums_acc, cnt_acc, mse_acc) = refs[p_end:]

    step = pl.program_id(0)
    last = pl.num_programs(0) - 1

    # ---- init accumulators on the first row tile ----
    @pl.when(step == 0)
    def _():
        gram_acc[...] = jnp.zeros_like(gram_acc)
        sums_acc[...] = jnp.zeros_like(sums_acc)
        cnt_acc[...] = jnp.zeros_like(cnt_acc)
        mse_acc[...] = jnp.zeros_like(mse_acc)

    # ---- MLP backbone for this row tile ----
    h = x_ref[...]                                            # (TN, d_in)
    for blk in range(n_blocks):
        w = param_refs[2 * blk][...]                          # (d_prev, d_block)
        b = param_refs[2 * blk + 1][...]                      # (1, d_block)
        h = jnp.maximum(
            jnp.dot(h, w, preferred_element_type=jnp.float32) + b, 0.0)
        # Dropout == identity at inference.
        # TODO(synk): training-mode dropout needs pltpu.prng_seed / prng_random_bits.
    feats_ref[...] = h                                        # backbone features (x)

    # Head, lane-dense: preds (d_out, TN) = wh_t @ h^T via transposed-RHS dot_general.
    wh_t = param_refs[2 * n_blocks][...]                      # (d_out, D), pre-transposed host-side
    bh = param_refs[2 * n_blocks + 1][...]                    # (d_out, 1)
    preds = lax.dot_general(wh_t, h, (((1,), (1,)), ((), ())),
                            preferred_element_type=jnp.float32) + bh
    preds_ref[...] = preds

    # ---- CORAL accumulation for this tile ----
    # TODO(synk): base loss hardcodes MSE; original `lf` is an arbitrary injected callable.
    ys = ys_ref[...]                                          # (1, TN)
    diff = preds - ys
    mse_acc[...] += jnp.sum(diff * diff, keepdims=True)       # (1, 1)

    # Domain masks, column-oriented (TN, 8): col i (i < nd) -> folds in [i, i+nd);
    # col nd -> all ones (base statistics); remaining cols zero.  Built purely from
    # iota + Python scalars (no captured constants).
    folds = folds_ref[...]                                    # (TN, 1)
    tn, d = h.shape
    col = lax.broadcasted_iota(jnp.int32, (tn, 8), 1).astype(jnp.float32)
    in_dom = ((folds >= col) & (folds < col + float(nd))).astype(jnp.float32)
    masks = jnp.where(col < float(nd), in_dom,
                      (col == float(nd)).astype(jnp.float32))  # (TN, 8)

    # Masked sums (one small MXU op) and per-domain counts.
    sums_acc[...] += lax.dot_general(masks, h, (((0,), (0,)), ((), ())),
                                     preferred_element_type=jnp.float32)   # (8, D)
    cnt_acc[...] += jnp.sum(masks, axis=0, keepdims=True)                  # (1, 8)

    # Raw Grams (shift-invariant covariance identity applied at finalize).
    # One-sided masking is exact: h^T diag(m) h == h^T (m*h).
    for i in range(nd):
        hm = h * masks[:, i:i + 1]
        gram_acc[i] = gram_acc[i] + lax.dot_general(
            h, hm, (((0,), (0,)), ((), ())), preferred_element_type=jnp.float32)
    gram_acc[nd] = gram_acc[nd] + lax.dot_general(
        h, h, (((0,), (0,)), ((), ())), preferred_element_type=jnp.float32)

    # ---- finalize CORAL loss on the last tile ----
    @pl.when(step == last)
    def _():
        inv_n = 1.0 / n_total
        inv_nm1 = 1.0 / max(n_total - 1, 1)
        scale = 1.0 / (4.0 * d * d)

        cnt = cnt_acc[...]                                    # (1, 8)
        sums = sums_acc[...]                                  # (8, D)

        # base covariance: cov = (G - s s^T / n) / (n - 1)  (shift-invariant form)
        s_base = sums[nd:nd + 1, :]                           # (1, D)
        outer_base = lax.dot_general(s_base, s_base, (((0,), (0,)), ((), ())),
                                     preferred_element_type=jnp.float32)
        base_cov = (gram_acc[nd] - outer_base * inv_n) * inv_nm1

        contrib = jnp.zeros((1, 1), jnp.float32)
        n_valid = jnp.zeros((1, 1), jnp.float32)
        for i in range(nd):                                   # static unrolled, nd == 5
            c = cnt[0:1, i:i + 1]                             # (1, 1) domain count
            valid = (c > 1.5).astype(jnp.float32)             # == (count >= 2), matches sum(id_dom) > 1
            safe_c = jnp.maximum(c, 2.0)
            inv_c = pl.reciprocal(safe_c, approx=False)
            inv_cm1 = pl.reciprocal(safe_c - 1.0, approx=False)
            s_i = sums[i:i + 1, :]                            # (1, D)
            outer_i = lax.dot_general(s_i, s_i, (((0,), (0,)), ((), ())),
                                      preferred_element_type=jnp.float32)
            cov_i = (gram_acc[i] - outer_i * inv_c) * inv_cm1
            dcov = base_cov - cov_i
            contrib = contrib + valid * jnp.sum(dcov * dcov, keepdims=True)
            n_valid = n_valid + valid

        denom_inv = pl.reciprocal(jnp.maximum(n_valid, 1.0), approx=False)
        loss_ref[...] = mse_acc[...] * inv_n + scale * contrib * denom_inv


def model_forward_coral_loss(x_num, x_bin, x_cat, cat_cardinalities,
                             block_params, head_params, ys, ids, fold_by_id,
                             n_parts=N_PARTS, row_tile=None):
    """Identity(num) ++ Identity(bin) ++ OneHot(cat) -> MLP -> (preds, feats) and CORAL loss."""
    # Host-side encoding / concat (pure layout prep, mirrors OneHotEncoding0d + torch.cat).
    onehots = [jax.nn.one_hot(x_cat[:, j], c, dtype=jnp.float32)
               for j, c in enumerate(cat_cardinalities)]
    x_in = jnp.concatenate(
        [x_num.astype(jnp.float32), x_bin.astype(jnp.float32)] + onehots, axis=1)

    n, d_in = x_in.shape
    n_blocks = len(block_params)
    d_block = block_params[-1][0].shape[1]
    d_out = head_params[0].shape[1]
    n_domains = (n_parts + 1) // 2

    # Row tile: whole N when small; cap otherwise.  Use ~half this cap on v7x (64 MiB VMEM).
    if row_tile is None:
        row_tile = n if n <= 512 else 512
    assert n % row_tile == 0 and (row_tile == n or row_tile % 128 == 0)
    nt = n // row_tile

    flat = []
    for w, b in block_params:
        flat += [w.astype(jnp.float32), b.astype(jnp.float32).reshape(1, -1)]
    flat += [head_params[0].astype(jnp.float32).T,               # (d_out, D) pre-transposed
             head_params[1].astype(jnp.float32).reshape(-1, 1)]  # (d_out, 1)

    ys_row = ys.astype(jnp.float32).reshape(1, n)
    folds_col = fold_by_id[ids].astype(jnp.float32).reshape(n, 1)

    in_specs = [pl.BlockSpec((row_tile, d_in), lambda i: (i, 0))]
    for arr in flat:                                             # weights pinned across tiles
        in_specs.append(pl.BlockSpec(arr.shape, lambda i: (0, 0)))
    in_specs.append(pl.BlockSpec((1, row_tile), lambda i: (0, i)))   # ys (lane-dense row)
    in_specs.append(pl.BlockSpec((row_tile, 1), lambda i: (i, 0)))   # folds (column)

    out_specs = (pl.BlockSpec((d_out, row_tile), lambda i: (0, i)),    # preds, lane-dense
                 pl.BlockSpec((row_tile, d_block), lambda i: (i, 0)),  # feats
                 pl.BlockSpec((1, 1), lambda i: (0, 0)))               # loss (resident acc)
    out_shape = (jax.ShapeDtypeStruct((d_out, n), jnp.float32),
                 jax.ShapeDtypeStruct((n, d_block), jnp.float32),
                 jax.ShapeDtypeStruct((1, 1), jnp.float32))

    scratch_shapes = [
        pltpu.VMEM((n_domains + 1, d_block, d_block), jnp.float32),  # per-domain + base Grams
        pltpu.VMEM((8, d_block), jnp.float32),                       # per-domain + base sums
        pltpu.VMEM((1, 8), jnp.float32),                             # per-domain counts
        pltpu.VMEM((1, 1), jnp.float32),                             # MSE partial sum
    ]

    kernel = functools.partial(fused_kernel, n_blocks=n_blocks,
                               n_domains=n_domains, n_total=n)
    preds_t, feats, loss = pl.pallas_call(
        kernel,
        grid=(nt,),
        in_specs=in_specs,
        out_specs=out_specs,
        out_shape=out_shape,
        scratch_shapes=scratch_shapes,
        compiler_params=pltpu.CompilerParams(
            # Row axis carries the loss reduction (resident accumulators) -> "arbitrary".
            dimension_semantics=("arbitrary",),
            vmem_limit_bytes=32 * 1024 * 1024),
    )(x_in, *flat, ys_row, folds_col)

    return jnp.transpose(preds_t), feats, loss[0, 0]


# --------------------------------------------------------------------------- #
# Host-side parameter setup (MyLoss.__init__) and numpy references
# --------------------------------------------------------------------------- #
def make_fold_by_id(times: np.ndarray, n_parts: int = N_PARTS) -> np.ndarray:
    """Replicates MyLoss.__init__ fold assignment (host-side parameter setup)."""
    times = np.asarray(times, np.float32)
    times_sorted = np.sort(times)
    fold_by_id = np.zeros_like(times)
    length = len(times_sorted)
    step = (length + n_parts - 1) // n_parts
    for i in range(n_parts):
        thr_low = times_sorted[step * i]
        thr_high = times_sorted[min(length - 1, step * (i + 1))]
        fold_by_id[(times <= thr_high) & (times > thr_low)] = i
    return fold_by_id


def reference_forward(x_num, x_bin, x_cat, cards, block_params, head_params):
    enc = [np.asarray(x_num, np.float32), np.asarray(x_bin, np.float32)]
    for j, c in enumerate(cards):
        enc.append(np.eye(c, dtype=np.float32)[np.asarray(x_cat)[:, j]])
    h = np.concatenate(enc, axis=1)
    for w, b in block_params:
        h = np.maximum(h @ np.asarray(w) + np.asarray(b), 0.0)
    preds = h @ np.asarray(head_params[0]) + np.asarray(head_params[1])
    return preds.astype(np.float32), h.astype(np.float32)


def reference_loss(preds, feats, ys, ids, fold_by_id, n_parts=N_PARTS):
    """Pure numpy port of MyLoss.forward."""
    preds = np.asarray(preds, np.float32).squeeze(-1)
    feats = np.asarray(feats, np.float32)
    ys = np.asarray(ys, np.float32)
    loss = np.mean((preds - ys) ** 2)

    def cov(v):
        v2 = v - v.mean(0)
        return (v2[:, :, None] @ v2[:, None, :]).sum(0) / (v2.shape[0] - 1)

    folds = fold_by_id[np.asarray(ids)]
    n_domains = (n_parts + 1) // 2
    covs = []
    for i in range(n_domains):
        id_dom = (folds < i + n_domains) & (folds >= i)
        if id_dom.sum() > 1:
            covs.append(cov(feats[id_dom]))
    base_cov = cov(feats)
    d = feats.shape[-1]
    for c in covs:
        loss += 1 / 4 / d**2 * ((base_cov - c) ** 2).sum() / len(covs)
    return np.float32(loss)


# --------------------------------------------------------------------------- #
if __name__ == "__main__":
    key = jax.random.PRNGKey(0)
    keys = jax.random.split(key, 12)

    N = 64
    N_NUM, N_BIN = 6, 3
    CAT_CARDS = [3, 5]
    D_BLOCK, N_BLOCKS = 32, 2
    N_IDS = 100

    # forward inputs
    x_num = jax.random.normal(keys[0], (N, N_NUM), jnp.float32)
    x_bin = (jax.random.uniform(keys[1], (N, N_BIN)) < 0.5).astype(jnp.float32)
    x_cat = jnp.stack([jax.random.randint(keys[2 + j], (N,), 0, c)
                       for j, c in enumerate(CAT_CARDS)], axis=1)

    d_in = N_NUM + N_BIN + sum(CAT_CARDS)

    def init_linear(k, din, dout, s=0.2):
        kw, kb = jax.random.split(k)
        return (s * jax.random.normal(kw, (din, dout), jnp.float32),
                s * jax.random.normal(kb, (dout,), jnp.float32))

    block_params = [init_linear(keys[4], d_in, D_BLOCK),
                    init_linear(keys[5], D_BLOCK, D_BLOCK)]
    head_params = init_linear(keys[6], D_BLOCK, 1)

    # loss inputs: targets, sample ids, survival-time-derived fold assignment
    ys = jax.random.normal(keys[7], (N,), jnp.float32)
    ids = jax.random.randint(keys[8], (N,), 0, N_IDS)
    times = np.asarray(jax.random.uniform(keys[9], (N_IDS,), jnp.float32, 0.0, 10.0))
    fold_by_id_np = make_fold_by_id(times)
    fold_by_id = jnp.asarray(fold_by_id_np)

    # Fused Pallas pipeline: Model.forward + MyLoss in one launch.
    preds, feats, loss = model_forward_coral_loss(
        x_num, x_bin, x_cat, CAT_CARDS, block_params, head_params,
        ys, ids, fold_by_id)
    preds, feats, loss = jax.block_until_ready((preds, feats, loss))

    # numpy references
    ref_preds, ref_feats = reference_forward(x_num, x_bin, x_cat, CAT_CARDS,
                                             block_params, head_params)
    ref_loss = reference_loss(ref_preds, ref_feats, np.asarray(ys), np.asarray(ids),
                              fold_by_id_np)

    np.testing.assert_allclose(np.asarray(preds), ref_preds, rtol=2e-3, atol=2e-3)
    np.testing.assert_allclose(np.asarray(feats), ref_feats, rtol=2e-3, atol=2e-3)
    np.testing.assert_allclose(float(loss), float(ref_loss), rtol=2e-3, atol=2e-3)
    print("KERNEL_OK")
</pallas_src>

<mosaic_0001>
module attributes {stable_mosaic.version = 11 : i64} {
  func.func @fused_kernel(%arg0: i32, %arg1: memref<64x17xf32, #tpu.memory_space<vmem>>, %arg2: memref<17x32xf32, #tpu.memory_space<vmem>>, %arg3: memref<1x32xf32, #tpu.memory_space<vmem>>, %arg4: memref<32x32xf32, #tpu.memory_space<vmem>>, %arg5: memref<1x32xf32, #tpu.memory_space<vmem>>, %arg6: memref<1x32xf32, #tpu.memory_space<vmem>>, %arg7: memref<1x1xf32, #tpu.memory_space<vmem>>, %arg8: memref<1x64xf32, #tpu.memory_space<vmem>>, %arg9: memref<64x1xf32, #tpu.memory_space<vmem>>, %arg10: memref<1x64xf32, #tpu.memory_space<vmem>>, %arg11: memref<64x32xf32, #tpu.memory_space<vmem>>, %arg12: memref<1x1xf32, #tpu.memory_space<vmem>>, %arg13: memref<6x32x32xf32, #tpu.memory_space<vmem>>, %arg14: memref<8x32xf32, #tpu.memory_space<vmem>>, %arg15: memref<1x8xf32, #tpu.memory_space<vmem>>, %arg16: memref<1x1xf32, #tpu.memory_space<vmem>>) attributes {dimension_semantics = [#tpu.dimension_semantics<arbitrary>], iteration_bounds = array<i64: 1>, scalar_prefetch = 0 : i64, scratch_operands = 4 : i64, tpu.core_type = #tpu.core_type<tc>, window_params = [{transform_indices = @transform_0, window_bounds = array<i64: 64, 17>}, {pipeline_mode = #tpu.pipeline_mode<synchronous>, transform_indices = @transform_1, window_bounds = array<i64: 17, 32>}, {pipeline_mode = #tpu.pipeline_mode<synchronous>, transform_indices = @transform_2, window_bounds = array<i64: 1, 32>}, {pipeline_mode = #tpu.pipeline_mode<synchronous>, transform_indices = @transform_3, window_bounds = array<i64: 32, 32>}, {pipeline_mode = #tpu.pipeline_mode<synchronous>, transform_indices = @transform_4, window_bounds = array<i64: 1, 32>}, {pipeline_mode = #tpu.pipeline_mode<synchronous>, transform_indices = @transform_5, window_bounds = array<i64: 1, 32>}, {pipeline_mode = #tpu.pipeline_mode<synchronous>, transform_indices = @transform_6, window_bounds = array<i64: 1, 1>}, {transform_indices = @transform_7, window_bounds = array<i64: 1, 64>}, {transform_indices = @transform_8, window_bounds = array<i64: 64, 1>}, {transform_indices = @transform_9, window_bounds = array<i64: 1, 64>}, {transform_indices = @transform_10, window_bounds = array<i64: 64, 32>}, {pipeline_mode = #tpu.pipeline_mode<synchronous>, transform_indices = @transform_11, window_bounds = array<i64: 1, 1>}]} {
    %c0_i32 = arith.constant 0 : i32
    %0 = arith.cmpi eq, %arg0, %c0_i32 : i32
    %1 = arith.extui %0 : i1 to i32
    %c0_i32_0 = arith.constant 0 : i32
    %2 = arith.cmpi ne, %1, %c0_i32_0 : i32
    scf.if %2 {
      %cst_83 = arith.constant 0.000000e+00 : f32
      %124 = vector.broadcast %cst_83 : f32 to vector<6x32x32xf32>
      %c0_84 = arith.constant 0 : index
      %c0_85 = arith.constant 0 : index
      %c0_86 = arith.constant 0 : index
      %125 = vector.load %arg13[%c0_84, %c0_85, %c0_86] : memref<6x32x32xf32, #tpu.memory_space<vmem>>, vector<6x32x32xf32>
      tpu.vector_store %arg13[%c0_84, %c0_85, %c0_86], %124 {strides = array<i32>} : memref<6x32x32xf32, #tpu.memory_space<vmem>>, vector<6x32x32xf32>,
      %cst_87 = arith.constant 0.000000e+00 : f32
      %126 = vector.broadcast %cst_87 : f32 to vector<8x32xf32>
      %c0_88 = arith.constant 0 : index
      %c0_89 = arith.constant 0 : index
      %127 = vector.load %arg14[%c0_88, %c0_89] : memref<8x32xf32, #tpu.memory_space<vmem>>, vector<8x32xf32>
      tpu.vector_store %arg14[%c0_88, %c0_89], %126 {strides = array<i32>} : memref<8x32xf32, #tpu.memory_space<vmem>>, vector<8x32xf32>,
      %cst_90 = arith.constant 0.000000e+00 : f32
      %128 = vector.broadcast %cst_90 : f32 to vector<1x8xf32>
      %c0_91 = arith.constant 0 : index
      %c0_92 = arith.constant 0 : index
      %129 = vector.load %arg15[%c0_91, %c0_92] : memref<1x8xf32, #tpu.memory_space<vmem>>, vector<1x8xf32>
      tpu.vector_store %arg15[%c0_91, %c0_92], %128 {strides = array<i32>} : memref<1x8xf32, #tpu.memory_space<vmem>>, vector<1x8xf32>,
      %cst_93 = arith.constant 0.000000e+00 : f32
      %130 = vector.broadcast %cst_93 : f32 to vector<1x1xf32>
      %c0_94 = arith.constant 0 : index
      %c0_95 = arith.constant 0 : index
      %131 = vector.load %arg16[%c0_94, %c0_95] : memref<1x1xf32, #tpu.memory_space<vmem>>, vector<1x1xf32>
      tpu.vector_store %arg16[%c0_94, %c0_95], %130 {strides = array<i32>} : memref<1x1xf32, #tpu.memory_space<vmem>>, vector<1x1xf32>,
    } else {
    }
    %c0 = arith.constant 0 : index
    %c0_1 = arith.constant 0 : index
    %3 = vector.load %arg1[%c0, %c0_1] : memref<64x17xf32, #tpu.memory_space<vmem>>, vector<64x17xf32>
    %c0_2 = arith.constant 0 : index
    %c0_3 = arith.constant 0 : index
    %4 = vector.load %arg2[%c0_2, %c0_3] : memref<17x32xf32, #tpu.memory_space<vmem>>, vector<17x32xf32>
    %c0_4 = arith.constant 0 : index
    %c0_5 = arith.constant 0 : index
    %5 = vector.load %arg3[%c0_4, %c0_5] : memref<1x32xf32, #tpu.memory_space<vmem>>, vector<1x32xf32>
    %cst = arith.constant dense<0.000000e+00> : vector<64x32xf32>
    %6 = tpu.matmul %3, %4, %cst {dimension_numbers = #tpu.dot_dimension_numbers<[1], [0], [0], [1], [0, 0, 1, 1], [], []>} : vector<64x17xf32>, vector<17x32xf32>, vector<64x32xf32> -> vector<64x32xf32>
    %7 = vector.broadcast %5 : vector<1x32xf32> to vector<64x32xf32>
    %8 = arith.addf %6, %7 : vector<64x32xf32>
    %cst_6 = arith.constant 0.000000e+00 : f32
    %9 = vector.broadcast %cst_6 : f32 to vector<64x32xf32>
    %10 = arith.maximumf %8, %9 : vector<64x32xf32>
    %c0_7 = arith.constant 0 : index
    %c0_8 = arith.constant 0 : index
    %11 = vector.load %arg4[%c0_7, %c0_8] : memref<32x32xf32, #tpu.memory_space<vmem>>, vector<32x32xf32>
    %c0_9 = arith.constant 0 : index
    %c0_10 = arith.constant 0 : index
    %12 = vector.load %arg5[%c0_9, %c0_10] : memref<1x32xf32, #tpu.memory_space<vmem>>, vector<1x32xf32>
    %cst_11 = arith.constant dense<0.000000e+00> : vector<64x32xf32>
    %13 = tpu.matmul %10, %11, %cst_11 {dimension_numbers = #tpu.dot_dimension_numbers<[1], [0], [0], [1], [0, 0, 1, 1], [], []>} : vector<64x32xf32>, vector<32x32xf32>, vector<64x32xf32> -> vector<64x32xf32>
    %14 = vector.broadcast %12 : vector<1x32xf32> to vector<64x32xf32>
    %15 = arith.addf %13, %14 : vector<64x32xf32>
    %cst_12 = arith.constant 0.000000e+00 : f32
    %16 = vector.broadcast %cst_12 : f32 to vector<64x32xf32>
    %17 = arith.maximumf %15, %16 : vector<64x32xf32>
    %c0_13 = arith.constant 0 : index
    %c0_14 = arith.constant 0 : index
    %18 = vector.load %arg11[%c0_13, %c0_14] : memref<64x32xf32, #tpu.memory_space<vmem>>, vector<64x32xf32>
    tpu.vector_store %arg11[%c0_13, %c0_14], %17 {strides = array<i32>} : memref<64x32xf32, #tpu.memory_space<vmem>>, vector<64x32xf32>,
    %c0_15 = arith.constant 0 : index
    %c0_16 = arith.constant 0 : index
    %19 = vector.load %arg6[%c0_15, %c0_16] : memref<1x32xf32, #tpu.memory_space<vmem>>, vector<1x32xf32>
    %c0_17 = arith.constant 0 : index
    %c0_18 = arith.constant 0 : index
    %20 = vector.load %arg7[%c0_17, %c0_18] : memref<1x1xf32, #tpu.memory_space<vmem>>, vector<1x1xf32>
    %cst_19 = arith.constant dense<0.000000e+00> : vector<1x64xf32>
    %21 = tpu.matmul %19, %17, %cst_19 {dimension_numbers = #tpu.dot_dimension_numbers<[1], [1], [0], [0], [0, 0, 1, 0], [], []>} : vector<1x32xf32>, vector<64x32xf32>, vector<1x64xf32> -> vector<1x64xf32>
    %22 = vector.broadcast %20 : vector<1x1xf32> to vector<1x64xf32>
    %23 = arith.addf %21, %22 : vector<1x64xf32>
    %c0_20 = arith.constant 0 : index
    %c0_21 = arith.constant 0 : index
    %24 = vector.load %arg10[%c0_20, %c0_21] : memref<1x64xf32, #tpu.memory_space<vmem>>, vector<1x64xf32>
    tpu.vector_store %arg10[%c0_20, %c0_21], %23 {strides = array<i32>} : memref<1x64xf32, #tpu.memory_space<vmem>>, vector<1x64xf32>,
    %c0_22 = arith.constant 0 : index
    %c0_23 = arith.constant 0 : index
    %25 = vector.load %arg8[%c0_22, %c0_23] : memref<1x64xf32, #tpu.memory_space<vmem>>, vector<1x64xf32>
    %26 = arith.subf %23, %25 : vector<1x64xf32>
    %c0_24 = arith.constant 0 : index
    %c0_25 = arith.constant 0 : index
    %27 = vector.load %arg16[%c0_24, %c0_25] : memref<1x1xf32, #tpu.memory_space<vmem>>, vector<1x1xf32>
    %28 = arith.mulf %26, %26 : vector<1x64xf32>
    %29 = vector.shape_cast %28 : vector<1x64xf32> to vector<1x1x64xf32>
    %cst_26 = arith.constant dense<0.000000e+00> : vector<1xf32>
    %30 = vector.multi_reduction <add>, %29, %cst_26 [1, 2] : vector<1x1x64xf32> to vector<1xf32>
    %31 = vector.shape_cast %30 : vector<1xf32> to vector<1x1x1xf32>
    %32 = vector.extract %31[0, 0, 0] : f32 from vector<1x1x1xf32>
    %33 = vector.broadcast %32 : f32 to vector<1x1xf32>
    %34 = arith.addf %27, %33 : vector<1x1xf32>
    %c0_27 = arith.constant 0 : index
    %c0_28 = arith.constant 0 : index
    %35 = vector.load %arg16[%c0_27, %c0_28] : memref<1x1xf32, #tpu.memory_space<vmem>>, vector<1x1xf32>
    tpu.vector_store %arg16[%c0_27, %c0_28], %34 {strides = array<i32>} : memref<1x1xf32, #tpu.memory_space<vmem>>, vector<1x1xf32>,
    %c0_29 = arith.constant 0 : index
    %c0_30 = arith.constant 0 : index
    %36 = vector.load %arg9[%c0_29, %c0_30] : memref<64x1xf32, #tpu.memory_space<vmem>>, vector<64x1xf32>
    %37 = tpu.iota {dimensions = array<i32: 1>} : vector<64x8xi32>
    %38 = arith.sitofp %37 : vector<64x8xi32> to vector<64x8xf32>
    %39 = vector.broadcast %36 : vector<64x1xf32> to vector<64x8xf32>
    %40 = arith.cmpf oge, %39, %38 : vector<64x8xf32>
    %cst_31 = arith.constant 5.000000e+00 : f32
    %41 = vector.broadcast %cst_31 : f32 to vector<64x8xf32>
    %42 = arith.addf %38, %41 : vector<64x8xf32>
    %43 = vector.broadcast %36 : vector<64x1xf32> to vector<64x8xf32>
    %44 = arith.cmpf olt, %43, %42 : vector<64x8xf32>
    %45 = arith.andi %40, %44 : vector<64x8xi1>
    %46 = arith.extui %45 : vector<64x8xi1> to vector<64x8xi32>
    %47 = arith.sitofp %46 : vector<64x8xi32> to vector<64x8xf32>
    %cst_32 = arith.constant 5.000000e+00 : f32
    %48 = vector.broadcast %cst_32 : f32 to vector<64x8xf32>
    %49 = arith.cmpf olt, %38, %48 : vector<64x8xf32>
    %cst_33 = arith.constant 5.000000e+00 : f32
    %50 = vector.broadcast %cst_33 : f32 to vector<64x8xf32>
    %51 = arith.cmpf oeq, %38, %50 : vector<64x8xf32>
    %52 = arith.extui %51 : vector<64x8xi1> to vector<64x8xi32>
    %53 = arith.sitofp %52 : vector<64x8xi32> to vector<64x8xf32>
    %54 = arith.select %49, %47, %53 : vector<64x8xi1>, vector<64x8xf32>
    %c0_34 = arith.constant 0 : index
    %c0_35 = arith.constant 0 : index
    %55 = vector.load %arg14[%c0_34, %c0_35] : memref<8x32xf32, #tpu.memory_space<vmem>>, vector<8x32xf32>
    %cst_36 = arith.constant dense<0.000000e+00> : vector<8x32xf32>
    %56 = tpu.matmul %54, %17, %cst_36 {dimension_numbers = #tpu.dot_dimension_numbers<[0], [0], [1], [1], [0, 1, 1, 1], [], []>} : vector<64x8xf32>, vector<64x32xf32>, vector<8x32xf32> -> vector<8x32xf32>
    %57 = arith.addf %55, %56 : vector<8x32xf32>
    %c0_37 = arith.constant 0 : index
    %c0_38 = arith.constant 0 : index
    %58 = vector.load %arg14[%c0_37, %c0_38] : memref<8x32xf32, #tpu.memory_space<vmem>>, vector<8x32xf32>
    tpu.vector_store %arg14[%c0_37, %c0_38], %57 {strides = array<i32>} : memref<8x32xf32, #tpu.memory_space<vmem>>, vector<8x32xf32>,
    %c0_39 = arith.constant 0 : index
    %c0_40 = arith.constant 0 : index
    %59 = vector.load %arg15[%c0_39, %c0_40] : memref<1x8xf32, #tpu.memory_space<vmem>>, vector<1x8xf32>
    %cst_41 = arith.constant dense<0.000000e+00> : vector<8xf32>
    %60 = vector.multi_reduction <add>, %54, %cst_41 [0] : vector<64x8xf32> to vector<8xf32>
    %61 = vector.shape_cast %60 : vector<8xf32> to vector<1x8xf32>
    %62 = arith.addf %59, %61 : vector<1x8xf32>
    %c0_42 = arith.constant 0 : index
    %c0_43 = arith.constant 0 : index
    %63 = vector.load %arg15[%c0_42, %c0_43] : memref<1x8xf32, #tpu.memory_space<vmem>>, vector<1x8xf32>
    tpu.vector_store %arg15[%c0_42, %c0_43], %62 {strides = array<i32>} : memref<1x8xf32, #tpu.memory_space<vmem>>, vector<1x8xf32>,
    %64 = vector.extract_strided_slice %54 {offsets = [0, 0], sizes = [64, 1], strides = [1, 1]} : vector<64x8xf32> to vector<64x1xf32>
    %65 = vector.broadcast %64 : vector<64x1xf32> to vector<64x32xf32>
    %66 = arith.mulf %17, %65 : vector<64x32xf32>
    %c0_44 = arith.constant 0 : index
    %c0_45 = arith.constant 0 : index
    %c0_46 = arith.constant 0 : index
    %67 = vector.load %arg13[%c0_44, %c0_45, %c0_46] : memref<6x32x32xf32, #tpu.memory_space<vmem>>, vector<1x32x32xf32>
    %68 = vector.shape_cast %67 : vector<1x32x32xf32> to vector<32x32xf32>
    %cst_47 = arith.constant dense<0.000000e+00> : vector<32x32xf32>
    %69 = tpu.matmul %17, %66, %cst_47 {dimension_numbers = #tpu.dot_dimension_numbers<[0], [0], [1], [1], [0, 1, 1, 1], [], []>} : vector<64x32xf32>, vector<64x32xf32>, vector<32x32xf32> -> vector<32x32xf32>
    %70 = arith.addf %68, %69 : vector<32x32xf32>
    %c0_48 = arith.constant 0 : index
    %c0_49 = arith.constant 0 : index
    %c0_50 = arith.constant 0 : index
    %71 = vector.load %arg13[%c0_48, %c0_49, %c0_50] : memref<6x32x32xf32, #tpu.memory_space<vmem>>, vector<1x32x32xf32>
    %72 = vector.shape_cast %71 : vector<1x32x32xf32> to vector<32x32xf32>
    %73 = vector.shape_cast %70 : vector<32x32xf32> to vector<1x32x32xf32>
    tpu.vector_store %arg13[%c0_48, %c0_49, %c0_50], %73 {strides = array<i32>} : memref<6x32x32xf32, #tpu.memory_space<vmem>>, vector<1x32x32xf32>,
    %74 = vector.extract_strided_slice %54 {offsets = [0, 1], sizes = [64, 1], strides = [1, 1]} : vector<64x8xf32> to vector<64x1xf32>
    %75 = vector.broadcast %74 : vector<64x1xf32> to vector<64x32xf32>
    %76 = arith.mulf %17, %75 : vector<64x32xf32>
    %c1 = arith.constant 1 : index
    %c0_51 = arith.constant 0 : index
    %c0_52 = arith.constant 0 : index
    %77 = vector.load %arg13[%c1, %c0_51, %c0_52] : memref<6x32x32xf32, #tpu.memory_space<vmem>>, vector<1x32x32xf32>
    %78 = vector.shape_cast %77 : vector<1x32x32xf32> to vector<32x32xf32>
    %cst_53 = arith.constant dense<0.000000e+00> : vector<32x32xf32>
    %79 = tpu.matmul %17, %76, %cst_53 {dimension_numbers = #tpu.dot_dimension_numbers<[0], [0], [1], [1], [0, 1, 1, 1], [], []>} : vector<64x32xf32>, vector<64x32xf32>, vector<32x32xf32> -> vector<32x32xf32>
    %80 = arith.addf %78, %79 : vector<32x32xf32>
    %c1_54 = arith.constant 1 : index
    %c0_55 = arith.constant 0 : index
    %c0_56 = arith.constant 0 : index
    %81 = vector.load %arg13[%c1_54, %c0_55, %c0_56] : memref<6x32x32xf32, #tpu.memory_space<vmem>>, vector<1x32x32xf32>
    %82 = vector.shape_cast %81 : vector<1x32x32xf32> to vector<32x32xf32>
    %83 = vector.shape_cast %80 : vector<32x32xf32> to vector<1x32x32xf32>
    tpu.vector_store %arg13[%c1_54, %c0_55, %c0_56], %83 {strides = array<i32>} : memref<6x32x32xf32, #tpu.memory_space<vmem>>, vector<1x32x32xf32>,
    %84 = vector.extract_strided_slice %54 {offsets = [0, 2], sizes = [64, 1], strides = [1, 1]} : vector<64x8xf32> to vector<64x1xf32>
    %85 = vector.broadcast %84 : vector<64x1xf32> to vector<64x32xf32>
    %86 = arith.mulf %17, %85 : vector<64x32xf32>
    %c2 = arith.constant 2 : index
    %c0_57 = arith.constant 0 : index
    %c0_58 = arith.constant 0 : index
    %87 = vector.load %arg13[%c2, %c0_57, %c0_58] : memref<6x32x32xf32, #tpu.memory_space<vmem>>, vector<1x32x32xf32>
    %88 = vector.shape_cast %87 : vector<1x32x32xf32> to vector<32x32xf32>
    %cst_59 = arith.constant dense<0.000000e+00> : vector<32x32xf32>
    %89 = tpu.matmul %17, %86, %cst_59 {dimension_numbers = #tpu.dot_dimension_numbers<[0], [0], [1], [1], [0, 1, 1, 1], [], []>} : vector<64x32xf32>, vector<64x32xf32>, vector<32x32xf32> -> vector<32x32xf32>
    %90 = arith.addf %88, %89 : vector<32x32xf32>
    %c2_60 = arith.constant 2 : index
    %c0_61 = arith.constant 0 : index
    %c0_62 = arith.constant 0 : index
    %91 = vector.load %arg13[%c2_60, %c0_61, %c0_62] : memref<6x32x32xf32, #tpu.memory_space<vmem>>, vector<1x32x32xf32>
    %92 = vector.shape_cast %91 : vector<1x32x32xf32> to vector<32x32xf32>
    %93 = vector.shape_cast %90 : vector<32x32xf32> to vector<1x32x32xf32>
    tpu.vector_store %arg13[%c2_60, %c0_61, %c0_62], %93 {strides = array<i32>} : memref<6x32x32xf32, #tpu.memory_space<vmem>>, vector<1x32x32xf32>,
    %94 = vector.extract_strided_slice %54 {offsets = [0, 3], sizes = [64, 1], strides = [1, 1]} : vector<64x8xf32> to vector<64x1xf32>
    %95 = vector.broadcast %94 : vector<64x1xf32> to vector<64x32xf32>
    %96 = arith.mulf %17, %95 : vector<64x32xf32>
    %c3 = arith.constant 3 : index
    %c0_63 = arith.constant 0 : index
    %c0_64 = arith.constant 0 : index
    %97 = vector.load %arg13[%c3, %c0_63, %c0_64] : memref<6x32x32xf32, #tpu.memory_space<vmem>>, vector<1x32x32xf32>
    %98 = vector.shape_cast %97 : vector<1x32x32xf32> to vector<32x32xf32>
    %cst_65 = arith.constant dense<0.000000e+00> : vector<32x32xf32>
    %99 = tpu.matmul %17, %96, %cst_65 {dimension_numbers = #tpu.dot_dimension_numbers<[0], [0], [1], [1], [0, 1, 1, 1], [], []>} : vector<64x32xf32>, vector<64x32xf32>, vector<32x32xf32> -> vector<32x32xf32>
    %100 = arith.addf %98, %99 : vector<32x32xf32>
    %c3_66 = arith.constant 3 : index
    %c0_67 = arith.constant 0 : index
    %c0_68 = arith.constant 0 : index
    %101 = vector.load %arg13[%c3_66, %c0_67, %c0_68] : memref<6x32x32xf32, #tpu.memory_space<vmem>>, vector<1x32x32xf32>
    %102 = vector.shape_cast %101 : vector<1x32x32xf32> to vector<32x32xf32>
    %103 = vector.shape_cast %100 : vector<32x32xf32> to vector<1x32x32xf32>
    tpu.vector_store %arg13[%c3_66, %c0_67, %c0_68], %103 {strides = array<i32>} : memref<6x32x32xf32, #tpu.memory_space<vmem>>, vector<1x32x32xf32>,
    %104 = vector.extract_strided_slice %54 {offsets = [0, 4], sizes = [64, 1], strides = [1, 1]} : vector<64x8xf32> to vector<64x1xf32>
    %105 = vector.broadcast %104 : vector<64x1xf32> to vector<64x32xf32>
    %106 = arith.mulf %17, %105 : vector<64x32xf32>
    %c4 = arith.constant 4 : index
    %c0_69 = arith.constant 0 : index
    %c0_70 = arith.constant 0 : index
    %107 = vector.load %arg13[%c4, %c0_69, %c0_70] : memref<6x32x32xf32, #tpu.memory_space<vmem>>, vector<1x32x32xf32>
    %108 = vector.shape_cast %107 : vector<1x32x32xf32> to vector<32x32xf32>
    %cst_71 = arith.constant dense<0.000000e+00> : vector<32x32xf32>
    %109 = tpu.matmul %17, %106, %cst_71 {dimension_numbers = #tpu.dot_dimension_numbers<[0], [0], [1], [1], [0, 1, 1, 1], [], []>} : vector<64x32xf32>, vector<64x32xf32>, vector<32x32xf32> -> vector<32x32xf32>
    %110 = arith.addf %108, %109 : vector<32x32xf32>
    %c4_72 = arith.constant 4 : index
    %c0_73 = arith.constant 0 : index
    %c0_74 = arith.constant 0 : index
    %111 = vector.load %arg13[%c4_72, %c0_73, %c0_74] : memref<6x32x32xf32, #tpu.memory_space<vmem>>, vector<1x32x32xf32>
    %112 = vector.shape_cast %111 : vector<1x32x32xf32> to vector<32x32xf32>
    %113 = vector.shape_cast %110 : vector<32x32xf32> to vector<1x32x32xf32>
    tpu.vector_store %arg13[%c4_72, %c0_73, %c0_74], %113 {strides = array<i32>} : memref<6x32x32xf32, #tpu.memory_space<vmem>>, vector<1x32x32xf32>,
    %c5 = arith.constant 5 : index
    %c0_75 = arith.constant 0 : index
    %c0_76 = arith.constant 0 : index
    %114 = vector.load %arg13[%c5, %c0_75, %c0_76] : memref<6x32x32xf32, #tpu.memory_space<vmem>>, vector<1x32x32xf32>
    %115 = vector.shape_cast %114 : vector<1x32x32xf32> to vector<32x32xf32>
    %cst_77 = arith.constant dense<0.000000e+00> : vector<32x32xf32>
    %116 = tpu.matmul %17, %17, %cst_77 {dimension_numbers = #tpu.dot_dimension_numbers<[0], [0], [1], [1], [0, 1, 1, 1], [], []>} : vector<64x32xf32>, vector<64x32xf32>, vector<32x32xf32> -> vector<32x32xf32>
    %117 = arith.addf %115, %116 : vector<32x32xf32>
    %c5_78 = arith.constant 5 : index
    %c0_79 = arith.constant 0 : index
    %c0_80 = arith.constant 0 : index
    %118 = vector.load %arg13[%c5_78, %c0_79, %c0_80] : memref<6x32x32xf32, #tpu.memory_space<vmem>>, vector<1x32x32xf32>
    %119 = vector.shape_cast %118 : vector<1x32x32xf32> to vector<32x32xf32>
    %120 = vector.shape_cast %117 : vector<32x32xf32> to vector<1x32x32xf32>
    tpu.vector_store %arg13[%c5_78, %c0_79, %c0_80], %120 {strides = array<i32>} : memref<6x32x32xf32, #tpu.memory_space<vmem>>, vector<1x32x32xf32>,
    %c0_i32_81 = arith.constant 0 : i32
    %121 = arith.cmpi eq, %arg0, %c0_i32_81 : i32
    %122 = arith.extui %121 : i1 to i32
    %c0_i32_82 = arith.constant 0 : i32
    %123 = arith.cmpi ne, %122, %c0_i32_82 : i32
    scf.if %123 {
      %c0_83 = arith.constant 0 : index
      %c0_84 = arith.constant 0 : index
      %124 = vector.load %arg15[%c0_83, %c0_84] : memref<1x8xf32, #tpu.memory_space<vmem>>, vector<1x8xf32>
      %c0_85 = arith.constant 0 : index
      %c0_86 = arith.constant 0 : index
      %125 = vector.load %arg14[%c0_85, %c0_86] : memref<8x32xf32, #tpu.memory_space<vmem>>, vector<8x32xf32>
      %126 = vector.extract_strided_slice %125 {offsets = [5, 0], sizes = [1, 32], strides = [1, 1]} : vector<8x32xf32> to vector<1x32xf32>
      %cst_87 = arith.constant dense<0.000000e+00> : vector<32x32xf32>
      %127 = tpu.matmul %126, %126, %cst_87 {dimension_numbers = #tpu.dot_dimension_numbers<[0], [0], [1], [1], [0, 1, 1, 1], [], []>} : vector<1x32xf32>, vector<1x32xf32>, vector<32x32xf32> -> vector<32x32xf32>
      %c5_88 = arith.constant 5 : index
      %c0_89 = arith.constant 0 : index
      %c0_90 = arith.constant 0 : index
      %128 = vector.load %arg13[%c5_88, %c0_89, %c0_90] : memref<6x32x32xf32, #tpu.memory_space<vmem>>, vector<1x32x32xf32>
      %129 = vector.shape_cast %128 : vector<1x32x32xf32> to vector<32x32xf32>
      %cst_91 = arith.constant 1.562500e-02 : f32
      %130 = vector.broadcast %cst_91 : f32 to vector<32x32xf32>
      %131 = arith.mulf %127, %130 : vector<32x32xf32>
      %132 = arith.subf %129, %131 : vector<32x32xf32>
      %cst_92 = arith.constant 0.0158730168 : f32
      %133 = vector.broadcast %cst_92 : f32 to vector<32x32xf32>
      %134 = arith.mulf %132, %133 : vector<32x32xf32>
      %cst_93 = arith.constant 0.000000e+00 : f32
      %135 = vector.broadcast %cst_93 : f32 to vector<1x1xf32>
      %cst_94 = arith.constant 0.000000e+00 : f32
      %136 = vector.broadcast %cst_94 : f32 to vector<1x1xf32>
      %137 = vector.extract_strided_slice %124 {offsets = [0, 0], sizes = [1, 1], strides = [1, 1]} : vector<1x8xf32> to vector<1x1xf32>
      %cst_95 = arith.constant 1.500000e+00 : f32
      %138 = vector.broadcast %cst_95 : f32 to vector<1x1xf32>
      %139 = arith.cmpf ogt, %137, %138 : vector<1x1xf32>
      %140 = arith.extui %139 : vector<1x1xi1> to vector<1x1xi32>
      %141 = arith.sitofp %140 : vector<1x1xi32> to vector<1x1xf32>
      %cst_96 = arith.constant 2.000000e+00 : f32
      %142 = vector.broadcast %cst_96 : f32 to vector<1x1xf32>
      %143 = arith.maximumf %137, %142 : vector<1x1xf32>
      %144 = tpu.reciprocal %143 : vector<1x1xf32> -> vector<1x1xf32>
      %cst_97 = arith.constant 1.000000e+00 : f32
      %145 = vector.broadcast %cst_97 : f32 to vector<1x1xf32>
      %146 = arith.subf %143, %145 : vector<1x1xf32>
      %147 = tpu.reciprocal %146 : vector<1x1xf32> -> vector<1x1xf32>
      %148 = vector.extract_strided_slice %125 {offsets = [0, 0], sizes = [1, 32], strides = [1, 1]} : vector<8x32xf32> to vector<1x32xf32>
      %cst_98 = arith.constant dense<0.000000e+00> : vector<32x32xf32>
      %149 = tpu.matmul %148, %148, %cst_98 {dimension_numbers = #tpu.dot_dimension_numbers<[0], [0], [1], [1], [0, 1, 1, 1], [], []>} : vector<1x32xf32>, vector<1x32xf32>, vector<32x32xf32> -> vector<32x32xf32>
      %c0_99 = arith.constant 0 : index
      %c0_100 = arith.constant 0 : index
      %c0_101 = arith.constant 0 : index
      %150 = vector.load %arg13[%c0_99, %c0_100, %c0_101] : memref<6x32x32xf32, #tpu.memory_space<vmem>>, vector<1x32x32xf32>
      %151 = vector.shape_cast %150 : vector<1x32x32xf32> to vector<32x32xf32>
      %152 = vector.broadcast %144 : vector<1x1xf32> to vector<32x32xf32>
      %153 = arith.mulf %149, %152 : vector<32x32xf32>
      %154 = arith.subf %151, %153 : vector<32x32xf32>
      %155 = vector.broadcast %147 : vector<1x1xf32> to vector<32x32xf32>
      %156 = arith.mulf %154, %155 : vector<32x32xf32>
      %157 = arith.subf %134, %156 : vector<32x32xf32>
      %158 = arith.mulf %157, %157 : vector<32x32xf32>
      %159 = vector.shape_cast %158 : vector<32x32xf32> to vector<1x32x32xf32>
      %cst_102 = arith.constant dense<0.000000e+00> : vector<1xf32>
      %160 = vector.multi_reduction <add>, %159, %cst_102 [1, 2] : vector<1x32x32xf32> to vector<1xf32>
      %161 = vector.shape_cast %160 : vector<1xf32> to vector<1x1x1xf32>
      %162 = vector.extract %161[0, 0, 0] : f32 from vector<1x1x1xf32>
      %163 = vector.broadcast %162 : f32 to vector<1x1xf32>
      %164 = arith.mulf %141, %163 : vector<1x1xf32>
      %165 = arith.addf %135, %164 : vector<1x1xf32>
      %166 = arith.addf %136, %141 : vector<1x1xf32>
      %167 = vector.extract_strided_slice %124 {offsets = [0, 1], sizes = [1, 1], strides = [1, 1]} : vector<1x8xf32> to vector<1x1xf32>
      %cst_103 = arith.constant 1.500000e+00 : f32
      %168 = vector.broadcast %cst_103 : f32 to vector<1x1xf32>
      %169 = arith.cmpf ogt, %167, %168 : vector<1x1xf32>
      %170 = arith.extui %169 : vector<1x1xi1> to vector<1x1xi32>
      %171 = arith.sitofp %170 : vector<1x1xi32> to vector<1x1xf32>
      %cst_104 = arith.constant 2.000000e+00 : f32
      %172 = vector.broadcast %cst_104 : f32 to vector<1x1xf32>
      %173 = arith.maximumf %167, %172 : vector<1x1xf32>
      %174 = tpu.reciprocal %173 : vector<1x1xf32> -> vector<1x1xf32>
      %cst_105 = arith.constant 1.000000e+00 : f32
      %175 = vector.broadcast %cst_105 : f32 to vector<1x1xf32>
      %176 = arith.subf %173, %175 : vector<1x1xf32>
      %177 = tpu.reciprocal %176 : vector<1x1xf32> -> vector<1x1xf32>
      %178 = vector.extract_strided_slice %125 {offsets = [1, 0], sizes = [1, 32], strides = [1, 1]} : vector<8x32xf32> to vector<1x32xf32>
      %cst_106 = arith.constant dense<0.000000e+00> : vector<32x32xf32>
      %179 = tpu.matmul %178, %178, %cst_106 {dimension_numbers = #tpu.dot_dimension_numbers<[0], [0], [1], [1], [0, 1, 1, 1], [], []>} : vector<1x32xf32>, vector<1x32xf32>, vector<32x32xf32> -> vector<32x32xf32>
      %c1_107 = arith.constant 1 : index
      %c0_108 = arith.constant 0 : index
      %c0_109 = arith.constant 0 : index
      %180 = vector.load %arg13[%c1_107, %c0_108, %c0_109] : memref<6x32x32xf32, #tpu.memory_space<vmem>>, vector<1x32x32xf32>
      %181 = vector.shape_cast %180 : vector<1x32x32xf32> to vector<32x32xf32>
      %182 = vector.broadcast %174 : vector<1x1xf32> to vector<32x32xf32>
      %183 = arith.mulf %179, %182 : vector<32x32xf32>
      %184 = arith.subf %181, %183 : vector<32x32xf32>
      %185 = vector.broadcast %177 : vector<1x1xf32> to vector<32x32xf32>
      %186 = arith.mulf %184, %185 : vector<32x32xf32>
      %187 = arith.subf %134, %186 : vector<32x32xf32>
      %188 = arith.mulf %187, %187 : vector<32x32xf32>
      %189 = vector.shape_cast %188 : vector<32x32xf32> to vector<1x32x32xf32>
      %cst_110 = arith.constant dense<0.000000e+00> : vector<1xf32>
      %190 = vector.multi_reduction <add>, %189, %cst_110 [1, 2] : vector<1x32x32xf32> to vector<1xf32>
      %191 = vector.shape_cast %190 : vector<1xf32> to vector<1x1x1xf32>
      %192 = vector.extract %191[0, 0, 0] : f32 from vector<1x1x1xf32>
      %193 = vector.broadcast %192 : f32 to vector<1x1xf32>
      %194 = arith.mulf %171, %193 : vector<1x1xf32>
      %195 = arith.addf %165, %194 : vector<1x1xf32>
      %196 = arith.addf %166, %171 : vector<1x1xf32>
      %197 = vector.extract_strided_slice %124 {offsets = [0, 2], sizes = [1, 1], strides = [1, 1]} : vector<1x8xf32> to vector<1x1xf32>
      %cst_111 = arith.constant 1.500000e+00 : f32
      %198 = vector.broadcast %cst_111 : f32 to vector<1x1xf32>
      %199 = arith.cmpf ogt, %197, %198 : vector<1x1xf32>
      %200 = arith.extui %199 : vector<1x1xi1> to vector<1x1xi32>
      %201 = arith.sitofp %200 : vector<1x1xi32> to vector<1x1xf32>
      %cst_112 = arith.constant 2.000000e+00 : f32
      %202 = vector.broadcast %cst_112 : f32 to vector<1x1xf32>
      %203 = arith.maximumf %197, %202 : vector<1x1xf32>
      %204 = tpu.reciprocal %203 : vector<1x1xf32> -> vector<1x1xf32>
      %cst_113 = arith.constant 1.000000e+00 : f32
      %205 = vector.broadcast %cst_113 : f32 to vector<1x1xf32>
      %206 = arith.subf %203, %205 : vector<1x1xf32>
      %207 = tpu.reciprocal %206 : vector<1x1xf32> -> vector<1x1xf32>
      %208 = vector.extract_strided_slice %125 {offsets = [2, 0], sizes = [1, 32], strides = [1, 1]} : vector<8x32xf32> to vector<1x32xf32>
      %cst_114 = arith.constant dense<0.000000e+00> : vector<32x32xf32>
      %209 = tpu.matmul %208, %208, %cst_114 {dimension_numbers = #tpu.dot_dimension_numbers<[0], [0], [1], [1], [0, 1, 1, 1], [], []>} : vector<1x32xf32>, vector<1x32xf32>, vector<32x32xf32> -> vector<32x32xf32>
      %c2_115 = arith.constant 2 : index
      %c0_116 = arith.constant 0 : index
      %c0_117 = arith.constant 0 : index
      %210 = vector.load %arg13[%c2_115, %c0_116, %c0_117] : memref<6x32x32xf32, #tpu.memory_space<vmem>>, vector<1x32x32xf32>
      %211 = vector.shape_cast %210 : vector<1x32x32xf32> to vector<32x32xf32>
      %212 = vector.broadcast %204 : vector<1x1xf32> to vector<32x32xf32>
      %213 = arith.mulf %209, %212 : vector<32x32xf32>
      %214 = arith.subf %211, %213 : vector<32x32xf32>
      %215 = vector.broadcast %207 : vector<1x1xf32> to vector<32x32xf32>
      %216 = arith.mulf %214, %215 : vector<32x32xf32>
      %217 = arith.subf %134, %216 : vector<32x32xf32>
      %218 = arith.mulf %217, %217 : vector<32x32xf32>
      %219 = vector.shape_cast %218 : vector<32x32xf32> to vector<1x32x32xf32>
      %cst_118 = arith.constant dense<0.000000e+00> : vector<1xf32>
      %220 = vector.multi_reduction <add>, %219, %cst_118 [1, 2] : vector<1x32x32xf32> to vector<1xf32>
      %221 = vector.shape_cast %220 : vector<1xf32> to vector<1x1x1xf32>
      %222 = vector.extract %221[0, 0, 0] : f32 from vector<1x1x1xf32>
      %223 = vector.broadcast %222 : f32 to vector<1x1xf32>
      %224 = arith.mulf %201, %223 : vector<1x1xf32>
      %225 = arith.addf %195, %224 : vector<1x1xf32>
      %226 = arith.addf %196, %201 : vector<1x1xf32>
      %227 = vector.extract_strided_slice %124 {offsets = [0, 3], sizes = [1, 1], strides = [1, 1]} : vector<1x8xf32> to vector<1x1xf32>
      %cst_119 = arith.constant 1.500000e+00 : f32
      %228 = vector.broadcast %cst_119 : f32 to vector<1x1xf32>
      %229 = arith.cmpf ogt, %227, %228 : vector<1x1xf32>
      %230 = arith.extui %229 : vector<1x1xi1> to vector<1x1xi32>
      %231 = arith.sitofp %230 : vector<1x1xi32> to vector<1x1xf32>
      %cst_120 = arith.constant 2.000000e+00 : f32
      %232 = vector.broadcast %cst_120 : f32 to vector<1x1xf32>
      %233 = arith.maximumf %227, %232 : vector<1x1xf32>
      %234 = tpu.reciprocal %233 : vector<1x1xf32> -> vector<1x1xf32>
      %cst_121 = arith.constant 1.000000e+00 : f32
      %235 = vector.broadcast %cst_121 : f32 to vector<1x1xf32>
      %236 = arith.subf %233, %235 : vector<1x1xf32>
      %237 = tpu.reciprocal %236 : vector<1x1xf32> -> vector<1x1xf32>
      %238 = vector.extract_strided_slice %125 {offsets = [3, 0], sizes = [1, 32], strides = [1, 1]} : vector<8x32xf32> to vector<1x32xf32>
      %cst_122 = arith.constant dense<0.000000e+00> : vector<32x32xf32>
      %239 = tpu.matmul %238, %238, %cst_122 {dimension_numbers = #tpu.dot_dimension_numbers<[0], [0], [1], [1], [0, 1, 1, 1], [], []>} : vector<1x32xf32>, vector<1x32xf32>, vector<32x32xf32> -> vector<32x32xf32>
      %c3_123 = arith.constant 3 : index
      %c0_124 = arith.constant 0 : index
      %c0_125 = arith.constant 0 : index
      %240 = vector.load %arg13[%c3_123, %c0_124, %c0_125] : memref<6x32x32xf32, #tpu.memory_space<vmem>>, vector<1x32x32xf32>
      %241 = vector.shape_cast %240 : vector<1x32x32xf32> to vector<32x32xf32>
      %242 = vector.broadcast %234 : vector<1x1xf32> to vector<32x32xf32>
      %243 = arith.mulf %239, %242 : vector<32x32xf32>
      %244 = arith.subf %241, %243 : vector<32x32xf32>
      %245 = vector.broadcast %237 : vector<1x1xf32> to vector<32x32xf32>
      %246 = arith.mulf %244, %245 : vector<32x32xf32>
      %247 = arith.subf %134, %246 : vector<32x32xf32>
      %248 = arith.mulf %247, %247 : vector<32x32xf32>
      %249 = vector.shape_cast %248 : vector<32x32xf32> to vector<1x32x32xf32>
      %cst_126 = arith.constant dense<0.000000e+00> : vector<1xf32>
      %250 = vector.multi_reduction <add>, %249, %cst_126 [1, 2] : vector<1x32x32xf32> to vector<1xf32>
      %251 = vector.shape_cast %250 : vector<1xf32> to vector<1x1x1xf32>
      %252 = vector.extract %251[0, 0, 0] : f32 from vector<1x1x1xf32>
      %253 = vector.broadcast %252 : f32 to vector<1x1xf32>
      %254 = arith.mulf %231, %253 : vector<1x1xf32>
      %255 = arith.addf %225, %254 : vector<1x1xf32>
      %256 = arith.addf %226, %231 : vector<1x1xf32>
      %257 = vector.extract_strided_slice %124 {offsets = [0, 4], sizes = [1, 1], strides = [1, 1]} : vector<1x8xf32> to vector<1x1xf32>
      %cst_127 = arith.constant 1.500000e+00 : f32
      %258 = vector.broadcast %cst_127 : f32 to vector<1x1xf32>
      %259 = arith.cmpf ogt, %257, %258 : vector<1x1xf32>
      %260 = arith.extui %259 : vector<1x1xi1> to vector<1x1xi32>
      %261 = arith.sitofp %260 : vector<1x1xi32> to vector<1x1xf32>
      %cst_128 = arith.constant 2.000000e+00 : f32
      %262 = vector.broadcast %cst_128 : f32 to vector<1x1xf32>
      %263 = arith.maximumf %257, %262 : vector<1x1xf32>
      %264 = tpu.reciprocal %263 : vector<1x1xf32> -> vector<1x1xf32>
      %cst_129 = arith.constant 1.000000e+00 : f32
      %265 = vector.broadcast %cst_129 : f32 to vector<1x1xf32>
      %266 = arith.subf %263, %265 : vector<1x1xf32>
      %267 = tpu.reciprocal %266 : vector<1x1xf32> -> vector<1x1xf32>
      %268 = vector.extract_strided_slice %125 {offsets = [4, 0], sizes = [1, 32], strides = [1, 1]} : vector<8x32xf32> to vector<1x32xf32>
      %cst_130 = arith.constant dense<0.000000e+00> : vector<32x32xf32>
      %269 = tpu.matmul %268, %268, %cst_130 {dimension_numbers = #tpu.dot_dimension_numbers<[0], [0], [1], [1], [0, 1, 1, 1], [], []>} : vector<1x32xf32>, vector<1x32xf32>, vector<32x32xf32> -> vector<32x32xf32>
      %c4_131 = arith.constant 4 : index
      %c0_132 = arith.constant 0 : index
      %c0_133 = arith.constant 0 : index
      %270 = vector.load %arg13[%c4_131, %c0_132, %c0_133] : memref<6x32x32xf32, #tpu.memory_space<vmem>>, vector<1x32x32xf32>
      %271 = vector.shape_cast %270 : vector<1x32x32xf32> to vector<32x32xf32>
      %272 = vector.broadcast %264 : vector<1x1xf32> to vector<32x32xf32>
      %273 = arith.mulf %269, %272 : vector<32x32xf32>
      %274 = arith.subf %271, %273 : vector<32x32xf32>
      %275 = vector.broadcast %267 : vector<1x1xf32> to vector<32x32xf32>
      %276 = arith.mulf %274, %275 : vector<32x32xf32>
      %277 = arith.subf %134, %276 : vector<32x32xf32>
      %278 = arith.mulf %277, %277 : vector<32x32xf32>
      %279 = vector.shape_cast %278 : vector<32x32xf32> to vector<1x32x32xf32>
      %cst_134 = arith.constant dense<0.000000e+00> : vector<1xf32>
      %280 = vector.multi_reduction <add>, %279, %cst_134 [1, 2] : vector<1x32x32xf32> to vector<1xf32>
      %281 = vector.shape_cast %280 : vector<1xf32> to vector<1x1x1xf32>
      %282 = vector.extract %281[0, 0, 0] : f32 from vector<1x1x1xf32>
      %283 = vector.broadcast %282 : f32 to vector<1x1xf32>
      %284 = arith.mulf %261, %283 : vector<1x1xf32>
      %285 = arith.addf %255, %284 : vector<1x1xf32>
      %286 = arith.addf %256, %261 : vector<1x1xf32>
      %cst_135 = arith.constant 1.000000e+00 : f32
      %287 = vector.broadcast %cst_135 : f32 to vector<1x1xf32>
      %288 = arith.maximumf %286, %287 : vector<1x1xf32>
      %289 = tpu.reciprocal %288 : vector<1x1xf32> -> vector<1x1xf32>
      %c0_136 = arith.constant 0 : index
      %c0_137 = arith.constant 0 : index
      %290 = vector.load %arg16[%c0_136, %c0_137] : memref<1x1xf32, #tpu.memory_space<vmem>>, vector<1x1xf32>
      %cst_138 = arith.constant 1.562500e-02 : f32
      %291 = vector.broadcast %cst_138 : f32 to vector<1x1xf32>
      %292 = arith.mulf %290, %291 : vector<1x1xf32>
      %cst_139 = arith.constant 2.44140625E-4 : f32
      %293 = vector.broadcast %cst_139 : f32 to vector<1x1xf32>
      %294 = arith.mulf %293, %285 : vector<1x1xf32>
      %295 = arith.mulf %294, %289 : vector<1x1xf32>
      %296 = arith.addf %292, %295 : vector<1x1xf32>
      %c0_140 = arith.constant 0 : index
      %c0_141 = arith.constant 0 : index
      %297 = vector.load %arg12[%c0_140, %c0_141] : memref<1x1xf32, #tpu.memory_space<vmem>>, vector<1x1xf32>
      tpu.vector_store %arg12[%c0_140, %c0_141], %296 {strides = array<i32>} : memref<1x1xf32, #tpu.memory_space<vmem>>, vector<1x1xf32>,
    } else {
    }
    return
  }
  func.func @transform_0(%arg0: i32) -> (i32, i32) {
    %c0_i32 = arith.constant 0 : i32
    %c0_i32_0 = arith.constant 0 : i32
    return %arg0, %c0_i32 : i32, i32
  }
  func.func @transform_1(%arg0: i32) -> (i32, i32) {
    %c0_i32 = arith.constant 0 : i32
    %c0_i32_0 = arith.constant 0 : i32
    %c0_i32_1 = arith.constant 0 : i32
    return %c0_i32, %c0_i32_0 : i32, i32
  }
  func.func @transform_2(%arg0: i32) -> (i32, i32) {
    %c0_i32 = arith.constant 0 : i32
    %c0_i32_0 = arith.constant 0 : i32
    %c0_i32_1 = arith.constant 0 : i32
    return %c0_i32, %c0_i32_0 : i32, i32
  }
  func.func @transform_3(%arg0: i32) -> (i32, i32) {
    %c0_i32 = arith.constant 0 : i32
    %c0_i32_0 = arith.constant 0 : i32
    %c0_i32_1 = arith.constant 0 : i32
    return %c0_i32, %c0_i32_0 : i32, i32
  }
  func.func @transform_4(%arg0: i32) -> (i32, i32) {
    %c0_i32 = arith.constant 0 : i32
    %c0_i32_0 = arith.constant 0 : i32
    %c0_i32_1 = arith.constant 0 : i32
    return %c0_i32, %c0_i32_0 : i32, i32
  }
  func.func @transform_5(%arg0: i32) -> (i32, i32) {
    %c0_i32 = arith.constant 0 : i32
    %c0_i32_0 = arith.constant 0 : i32
    %c0_i32_1 = arith.constant 0 : i32
    return %c0_i32, %c0_i32_0 : i32, i32
  }
  func.func @transform_6(%arg0: i32) -> (i32, i32) {
    %c0_i32 = arith.constant 0 : i32
    %c0_i32_0 = arith.constant 0 : i32
    %c0_i32_1 = arith.constant 0 : i32
    return %c0_i32, %c0_i32_0 : i32, i32
  }
  func.func @transform_7(%arg0: i32) -> (i32, i32) {
    %c0_i32 = arith.constant 0 : i32
    %c0_i32_0 = arith.constant 0 : i32
    return %c0_i32, %arg0 : i32, i32
  }
  func.func @transform_8(%arg0: i32) -> (i32, i32) {
    %c0_i32 = arith.constant 0 : i32
    %c0_i32_0 = arith.constant 0 : i32
    return %arg0, %c0_i32 : i32, i32
  }
  func.func @transform_9(%arg0: i32) -> (i32, i32) {
    %c0_i32 = arith.constant 0 : i32
    %c0_i32_0 = arith.constant 0 : i32
    return %c0_i32, %arg0 : i32, i32
  }
  func.func @transform_10(%arg0: i32) -> (i32, i32) {
    %c0_i32 = arith.constant 0 : i32
    %c0_i32_0 = arith.constant 0 : i32
    return %arg0, %c0_i32 : i32, i32
  }
  func.func @transform_11(%arg0: i32) -> (i32, i32) {
    %c0_i32 = arith.constant 0 : i32
    %c0_i32_0 = arith.constant 0 : i32
    %c0_i32_1 = arith.constant 0 : i32
    return %c0_i32, %c0_i32_0 : i32, i32
  }
}

</mosaic_0001>

<bundles_post_ra>
// kernel: tpu_custom_call.1
= control target key start
LH: loop header
LB: loop body
LE: loop exit
PB: predicated region body
PF: predicated region fallthrough
CT: control target
= control target key end

     0   :  { %s2946_s0 = inlined_call_operand.vmem [shape: f32[64,17], index: 0, kind: input, shape index: {}]   ;;  %s2947_s1 = inlined_call_operand.vmem [shape: f32[17,32], index: 1, kind: input, shape index: {}]   ;;  %s2948_s2 = inlined_call_operand.vmem [shape: f32[1,32], index: 2, kind: input, shape index: {}]   ;;  %s2949_s3 = inlined_call_operand.vmem [shape: f32[32,32], index: 3, kind: input, shape index: {}]   ;;  %s2950_s4 = inlined_call_operand.vmem [shape: f32[1,32], index: 4, kind: input, shape index: {}]   ;;  %s2951_s5 = inlined_call_operand.vmem [shape: f32[1,32], index: 5, kind: input, shape index: {}]   ;;  %s2952_s6 = inlined_call_operand.<no memory space> [shape: f32[1,1], index: 6, kind: input, shape index: {}]   ;;  %s2953_s7 = inlined_call_operand.vmem [shape: f32[1,64], index: 7, kind: input, shape index: {}]   ;;  %s2954_s8 = inlined_call_operand.vmem [shape: f32[64,1], index: 8, kind: input, shape index: {}]   ;;  %s2955_s9 = inlined_call_operand.hbm [shape: f32[1,64], index: 9, kind: output, shape index: {0}]   ;;  %s2956_s10 = inlined_call_operand.vmem [shape: f32[64,32], index: 10, kind: output, shape index: {1}]   ;;  %s2957_s11 = inlined_call_operand.hbm [shape: f32[1,1], index: 11, kind: output, shape index: {2}]  }
   0x1   :  { %v17_v0 = vstv %s2952_s6 }
   0x2   :  { %18 = vst [vmem:[#allocation6] sm:$0x1] %v17_v0 }
   0x3   :  { %19 = vsyncpa [#allocation8], 0  ;;  %v83_v1 = vld [vmem:[%s2947_s1 + $0x10] sm:$0x1]  ;;  %vm113_vm0 = vcmask 1040384   ;;  %v331_v2 = vld [vmem:[%s2954_s8] sm:$0xff] }
   0x4   :  { %v82_v3 = vld [vmem:[%s2947_s1 + $0x8] sm:$0xff]  ;;  %v2189_v4 = vmov 0   ;;  %1889 = vmatpush.msk.msra.mxu0 %vm113_vm0, %v83_v1  ;;  %v81_v5 = vld [vmem:[%s2947_s1] sm:$0xff]  ;;  %vm88_vm1 = vcmask 138240   ;;  %v333_v7 = vld [vmem:[%s2954_s8 + $0x10] sm:$0xff]  ;;  %1981 = vmatpush.msk.msra.mxu1 %vm113_vm0, %v83_v1 }
   0x5   :  { %2010 = vset.pattern.permute.xlu1 %v2189_v4  ;;  %2011 = vset.pattern.permute.xlu2 %v2189_v4  ;;  %v73_v6 = vld [vmem:[%s2946_s0] sm:$0xff] }
   0x6   :  { %344 = vperm.xlu1 %2010, %v331_v2   ;;  %131 = vmatpush.msra.mxu0 %v82_v3 }
   0x7   :  { %354 = vperm.xlu2 %2011, %v333_v7   ;;  %2009 = vset.pattern.permute.xlu0 %v2189_v4 }
   0x8   :  { %132 = vmatpush.msra.mxu0 %v81_v5  ;;  %1982 = vmatpush.msra.mxu1 %v82_v3 }
   0x9   :  { %20 = vsyncpa [#allocation10], 0  ;;  %1890 = vmatmul.msk.f32.vlgmr.msra.gmra.mxu0 %vm88_vm1, %v73_v6  ;;  %v332_v8 = vld [vmem:[%s2954_s8 + $0x8] sm:$0xff]  ;;  %v334_v9 = vld [vmem:[%s2954_s8 + $0x18] sm:$0xff]  ;;  %v339_v25 = vlaneseq  ;;  %vm43_vm2 = vcmask 261120   ;;  %v2190_v27 = vmov 0.0  }
   0xa   :  { %1983 = vmatpush.msra.mxu1 %v81_v5  ;;  %v74_v10 = vld [vmem:[%s2946_s0 + $0x8] sm:$0xff]  ;;  %v335_v11 = vld [vmem:[%s2954_s8 + $0x20] sm:$0xff]  ;;  %v75_v13 = vld [vmem:[%s2946_s0 + $0x10] sm:$0xff]  ;;  %44 = vst.msk [vmem:[#allocation2] sm:$0xff] %vm43_vm2, %v2190_v27  ;;  %vm495_vm13 = vcmask 64512   ;;  %s2196_s19 = smov 126  }
   0xb   :  { %v336_v12 = vld [vmem:[%s2954_s8 + $0x28] sm:$0xff]  ;;  %v80_v14 = vld [vmem:[%s2946_s0 + $0x38] sm:$0xff]  ;;  %v337_v15 = vld [vmem:[%s2954_s8 + $0x30] sm:$0xff]  ;;  %v340_v28 = vand.u32 127, %v339_v25  ;;  %45 = vst.msk [vmem:[#allocation2 + $0x8] sm:$0xff] %vm43_vm2, %v2190_v27  ;;  %s1860_s23 = sshll.u32 %s2955_s9, 4  ;;  %s1861_s23 = int_to_ptr.hbm [resolvable:$true] %s1860_s23 }
   0xc   :  { %1897 = vmatmul.msk.f32.vlgmr.msra.gmra.mxu1 %vm88_vm1, %v80_v14  ;;  %v338_v16 = vld [vmem:[%s2954_s8 + $0x38] sm:$0xff]  ;;  %v77_v18 = vld [vmem:[%s2946_s0 + $0x20] sm:$0xff]  ;;  %v78_v19 = vld [vmem:[%s2946_s0 + $0x28] sm:$0xff]  ;;  %46 = vst.msk [vmem:[#allocation2 + $0x10] sm:$0xff] %vm43_vm2, %v2190_v27  ;;  %s2198_s24 = smov [#allocation7]   ;;  %s2199_s26 = smov 124  }
   0xd   :  { %v76_v17 = vld [vmem:[%s2946_s0 + $0x18] sm:$0xff]  ;;  %v79_v20 = vld [vmem:[%s2946_s0 + $0x30] sm:$0xff]  ;;  %v167_v24 = vld [vmem:[%s2949_s3 + $0x8] sm:$0xff]  ;;  %47 = vst.msk [vmem:[#allocation2 + $0x18] sm:$0xff] %vm43_vm2, %v2190_v27  ;;  %v2356_v31 = vcvt.s32.f32 %v340_v28  ;;  %s1858_s6 = sshll.u32 %s2198_s24, 4  ;;  %s2200_s9 = smov [#allocation9]   ;;  %s1859_s6 = int_to_ptr.vmem [resolvable:$true] %s1858_s6 }
   0xe   :  { %349 = vperm.xlu1 %2010, %v332_v8   ;;  %v169_v21 = vld [vmem:[%s2949_s3 + $0x18] sm:$0xff]  ;;  %v168_v23 = vld [vmem:[%s2949_s3 + $0x10] sm:$0xff]  ;;  %v166_v26 = vld [vmem:[%s2949_s3] sm:$0xff]  ;;  %48 = vst.msk [vmem:[#allocation2 + $0x20] sm:$0xff] %vm43_vm2, %v2190_v27  ;;  %s1871_s27 = sshll.u32 %s2200_s9, 4  ;;  %s1873_s1 = sshll.u32 %s2957_s11, 4  ;;  %s1872_s27 = int_to_ptr.vmem [resolvable:$true] %s1871_s27  ;;  %s1874_s1 = int_to_ptr.hbm [resolvable:$true] %s1873_s1 }
   0xf   :  { %359 = vperm.xlu2 %2011, %v334_v9   ;;  %211 = vmatpush.msrb.mxu1 %v169_v21  ;;  %v257_v29 = vld [vmem:[#allocation6] sm:$0x1]  ;;  %49 = vst.msk [vmem:[#allocation2 + $0x28] sm:$0xff] %vm43_vm2, %v2190_v27  ;;  %v2367_v32 = vadd.f32 5.0, %v2356_v31  ;;  %vm424_vm3 = vcmp.eq.f32.partialorder %v2356_v31, 5.0  ;;  %vm423_vm4 = vcmp.lt.f32.partialorder %v2356_v31, 5.0 }
  0x10   :  { %260 = vperm.xlu0 %2009, %v257_v29   ;;  %50 = vst.msk [vmem:[#allocation2 + $0x30] sm:$0xff] %vm43_vm2, %v2190_v27  ;;  %v2380_v34 = vsel %vm424_vm3, 1.0, %v2190_v27  ;;  %v2430_v47 = vld [vmem:[%s2948_s2] ss:$0 sm:$0xff]  ;;  %s2197_s2 = smov 125  }
  0x11   :  { %1891 = vmatmul.msk.f32.gmra.mxu0 %vm88_vm1, %v74_v10  ;;  %212 = vmatpush.msrb.mxu1 %v168_v23  ;;  %51 = vst.msk [vmem:[#allocation2 + $0x38] sm:$0xff] %vm43_vm2, %v2190_v27 }
  0x12   :  { %52 = vst.msk [vmem:[#allocation2 + $0x40] sm:$0xff] %vm43_vm2, %v2190_v27 }
  0x13   :  { %213 = vmatpush.msrb.mxu1 %v167_v24  ;;  %53 = vst.msk [vmem:[#allocation2 + $0x48] sm:$0xff] %vm43_vm2, %v2190_v27 }
  0x14   :  { %54 = vst.msk [vmem:[#allocation2 + $0x50] sm:$0xff] %vm43_vm2, %v2190_v27 }
  0x15   :  { %214 = vmatpush.msrb.mxu1 %v166_v26  ;;  %55 = vst.msk [vmem:[#allocation2 + $0x58] sm:$0xff] %vm43_vm2, %v2190_v27  ;;  %v2191_v26 = vmov 1  }
  0x16   :  { %364 = vperm.xlu1 %2010, %v335_v11   ;;  %56 = vst.msk [vmem:[#allocation2 + $0x60] sm:$0xff] %vm43_vm2, %v2190_v27 }
  0x17   :  { %369 = vperm.xlu2 %2011, %v336_v12   ;;  %57 = vst.msk [vmem:[#allocation2 + $0x68] sm:$0xff] %vm43_vm2, %v2190_v27 }
  0x18   :  { %58 = vst.msk [vmem:[#allocation2 + $0x70] sm:$0xff] %vm43_vm2, %v2190_v27 }
  0x19   :  { %1892 = vmatmul.msk.f32.gmra.mxu0 %vm88_vm1, %v75_v13  ;;  %59 = vst.msk [vmem:[#allocation2 + $0x78] sm:$0xff] %vm43_vm2, %v2190_v27 }
  0x1a   :  { %60 = vst.msk [vmem:[#allocation2 + $0x80] sm:$0xff] %vm43_vm2, %v2190_v27 }
  0x1b   :  { %61 = vst.msk [vmem:[#allocation2 + $0x88] sm:$0xff] %vm43_vm2, %v2190_v27 }
  0x1c   :  { %62 = vst.msk [vmem:[#allocation2 + $0x90] sm:$0xff] %vm43_vm2, %v2190_v27 }
  0x1d   :  { %63 = vst.msk [vmem:[#allocation2 + $0x98] sm:$0xff] %vm43_vm2, %v2190_v27 }
  0x1e   :  { %374 = vperm.xlu1 %2010, %v337_v15   ;;  %64 = vst.msk [vmem:[#allocation2 + $0xa0] sm:$0xff] %vm43_vm2, %v2190_v27 }
  0x1f   :  { %379 = vperm.xlu2 %2011, %v338_v16   ;;  %65 = vst.msk [vmem:[#allocation2 + $0xa8] sm:$0xff] %vm43_vm2, %v2190_v27 }
  0x20   :  { %66 = vst.msk [vmem:[#allocation2 + $0xb0] sm:$0xff] %vm43_vm2, %v2190_v27 }
  0x21   :  { %1893 = vmatmul.msk.f32.gmra.mxu0 %vm88_vm1, %v76_v17  ;;  %67 = vst.msk [vmem:[#allocation2 + $0xb8] sm:$0xff] %vm43_vm2, %v2190_v27 }
  0x22   :  { %68 = vst.msk [vmem:[#allocation3] sm:$0xff] %vm43_vm2, %v2190_v27 }
  0x29   :  { %1894 = vmatmul.msk.f32.gmra.mxu0 %vm88_vm1, %v77_v18 }
  0x31   :  { %1895 = vmatmul.msk.f32.gmra.mxu0 %vm88_vm1, %v78_v19 }
  0x39   :  { %1896 = vmatmul.msk.f32.gmra.mxu0 %vm88_vm1, %v79_v20 }
  0x61   :  { %v355_v22 = vpop.permute.xlu2 %354 }
  0x62   :  { %vm384_vm7 = vcmp.ge.f32.partialorder %v355_v22, %v2356_v31  ;;  %vm393_vm8 = vcmp.lt.f32.partialorder %v355_v22, %v2367_v32 }
  0x63   :  { %vm401_vm10 = vmand %vm384_vm7, %vm393_vm8 }
  0x64   :  { %v1917_v38 = vsel %vm401_vm10, 1.0, %v2190_v27 }
  0x65   :  { %v429_v40 = vsel %vm423_vm4, %v1917_v38, %v2380_v34 }
  0x66   :  { %v499_v45 = vsel %vm495_vm13, %v429_v40, 0.0 }
  0x69   :  { %v360_v30 = vpop.permute.xlu2 %359 }
  0x6a   :  { %vm385_vm11 = vcmp.ge.f32.partialorder %v360_v30, %v2356_v31  ;;  %vm394_vm12 = vcmp.lt.f32.partialorder %v360_v30, %v2367_v32  ;;  %v2192_v30 = vmov 3  }
  0x6b   :  { %vm402_vm14 = vmand %vm385_vm11, %vm394_vm12 }
  0x6c   :  { %v1918_v42 = vsel %vm402_vm14, 1.0, %v2190_v27 }
  0x6d   :  { %v430_v50 = vsel %vm423_vm4, %v1918_v42, %v2380_v34 }
  0x6e   :  { %v501_v52 = vsel %vm495_vm13, %v430_v50, 0.0  ;;  %v2453_v61 = vpack.i.bf16 %v430_v50, %v429_v40 }
  0x71   :  { %v370_v35 = vpop.permute.xlu2 %369 }
  0x72   :  { %vm396_vm7 = vcmp.lt.f32.partialorder %v370_v35, %v2367_v32 }
  0x78   :  { %v345_v33 = vpop.permute.xlu1 %344 }
  0x79   :  { %vm382_vm5 = vcmp.ge.f32.partialorder %v345_v33, %v2356_v31  ;;  %vm391_vm6 = vcmp.lt.f32.partialorder %v345_v33, %v2367_v32  ;;  %v380_v44 = vpop.permute.xlu2 %379 }
  0x7a   :  { %vm399_vm9 = vmand %vm382_vm5, %vm391_vm6  ;;  %vm69_vm5 = vcmask 57344   ;;  %vm387_vm6 = vcmp.ge.f32.partialorder %v370_v35, %v2356_v31  ;;  %vm389_vm8 = vcmp.ge.f32.partialorder %v380_v44, %v2356_v31 }
  0x7b   :  { %v1915_v36 = vsel %vm399_vm9, 1.0, %v2190_v27  ;;  %70 = vst.msk [vmem:[#allocation4] sm:$0x1] %vm69_vm5, %v2190_v27  ;;  %vm398_vm9 = vcmp.lt.f32.partialorder %v380_v44, %v2367_v32  ;;  %vm404_vm10 = vmand %vm387_vm6, %vm396_vm7 }
  0x7c   :  { %v427_v37 = vsel %vm423_vm4, %v1915_v36, %v2380_v34  ;;  %vm406_vm14 = vmand %vm389_vm8, %vm398_vm9  ;;  %v1920_v59 = vsel %vm404_vm10, 1.0, %v2190_v27 }
  0x7d   :  { %436 = vxpose.xlu1.b32.start [1/8] (short) (narrow) %v427_v37, 8  ;;  %v496_v41 = vsel %vm495_vm13, %v427_v37, 0.0  ;;  %v1922_v0 = vsel %vm406_vm14, 1.0, %v2190_v27  ;;  %v432_v1 = vsel %vm423_vm4, %v1920_v59, %v2380_v34  ;;  %v2193_v59 = vmov 2  }
  0x7e   :  { %v505_v3 = vsel %vm495_vm13, %v432_v1, 0.0  ;;  %v434_v7 = vsel %vm423_vm4, %v1922_v0, %v2380_v34  ;;  %vm311_vm14 = vcmask 516096  }
  0x7f   :  { %v509_v14 = vsel %vm495_vm13, %v434_v7, 0.0 }
  0x80   :  { %v350_v39 = vpop.permute.xlu1 %349 }
  0x81   :  { %vm383_vm15 = vcmp.ge.f32.partialorder %v350_v39, %v2356_v31  ;;  %vm392_vm1 = vcmp.lt.f32.partialorder %v350_v39, %v2367_v32 }
  0x82   :  { %vm400_vm3 = vmand %vm383_vm15, %vm392_vm1  ;;  %v494_v33 = vld [vmem:[#allocation4] sm:$0x1] }
  0x83   :  { %v1916_v43 = vsel %vm400_vm3, 1.0, %v2190_v27 }
  0x84   :  { %v428_v46 = vsel %vm423_vm4, %v1916_v43, %v2380_v34 }
  0x85   :  { %v497_v48 = vsel %vm495_vm13, %v428_v46, 0.0  ;;  %437 = vxpose.xlu1.b32.cont [2/8] (short) (narrow) %v428_v46, 8  ;;  %v2435_v49 = vpack.i.bf16 %v428_v46, %v427_v37 }
  0x86   :  { %v498_v51 = vadd.f32 %v497_v48, %v496_v41  ;;  %v134_v53 = vpop.f32.mrf.mxu0 }
  0x87   :  { %2013 = vperm.xlu2 %2011, %v2435_v49   ;;  %v135_v55 = vadd.f32 %v2430_v47, %v134_v53 }
  0x88   :  { %v500_v54 = vadd.f32 %v499_v45, %v498_v51  ;;  %v365_v56 = vpop.permute.xlu1 %364 }
  0x89   :  { %vm386_vm11 = vcmp.ge.f32.partialorder %v365_v56, %v2356_v31  ;;  %vm395_vm12 = vcmp.lt.f32.partialorder %v365_v56, %v2367_v32  ;;  %v158_v57 = vmax.f32 %v135_v55, 0.0  ;;  %v155_v48 = vpop.f32.mrf.mxu1 }
  0x8a   :  { %vm403_vm15 = vmand %vm386_vm11, %vm395_vm12  ;;  %v502_v58 = vadd.f32 %v501_v52, %v500_v54  ;;  %v156_v53 = vadd.f32 %v2430_v47, %v155_v48  ;;  %vm468_vm12 = vcmask 523264  }
  0x8b   :  { %v1919_v60 = vsel %vm403_vm15, 1.0, %v2190_v27  ;;  %1898 = vmatmul.msk.f32.vlgmr.msrb.gmra.mxu1 %vm43_vm2, %v158_v57 }
  0x8c   :  { %v431_v62 = vsel %vm423_vm4, %v1919_v60, %v2380_v34 }
  0x8d   :  { %v503_v63 = vsel %vm495_vm13, %v431_v62, 0.0  ;;  %438 = vxpose.xlu1.b32.cont [3/8] (short) (narrow) %v429_v40, 8  ;;  %v2472_v9 = vpack.i.bf16 %v432_v1, %v431_v62 }
  0x8e   :  { %v504_v2 = vadd.f32 %v503_v63, %v502_v58  ;;  %v137_v5 = vpop.f32.mrf.mxu0  ;;  %v165_v58 = vmax.f32 %v156_v53, 0.0 }
  0x8f   :  { %2018 = vperm.xlu2 %2011, %v2453_v61   ;;  %v138_v6 = vadd.f32 %v2430_v47, %v137_v5  ;;  %v2528_v5 = vpop.permute.xlu0 %260 }
  0x90   :  { %v375_v8 = vpop.permute.xlu1 %374  ;;  %v506_v11 = vadd.f32 %v505_v3, %v504_v2 }
  0x91   :  { %vm388_vm1 = vcmp.ge.f32.partialorder %v375_v8, %v2356_v31  ;;  %vm397_vm3 = vcmp.lt.f32.partialorder %v375_v8, %v2367_v32  ;;  %v159_v10 = vmax.f32 %v138_v6, 0.0  ;;  %v2534_v8 = vld [vmem:[%s2950_s4] ss:$0 sm:$0xff] }
  0x92   :  { %vm405_vm6 = vmand %vm388_vm1, %vm397_vm3  ;;  %vm71_vm1 = vcmask 0  }
  0x93   :  { %v1921_v12 = vsel %vm405_vm6, 1.0, %v2190_v27  ;;  %1899 = vmatmul.msk.f32.gmra.mxu1 %vm43_vm2, %v159_v10  ;;  %72 = vst.msk [vmem:[#allocation5] sm:$0x1] %vm71_vm1, %v2190_v27 }
  0x94   :  { %v433_v13 = vsel %vm423_vm4, %v1921_v12, %v2380_v34 }
  0x95   :  { %v507_v15 = vsel %vm495_vm13, %v433_v13, 0.0  ;;  %439 = vxpose.xlu1.b32.cont [4/8] (short) (narrow) %v430_v50, 8  ;;  %v2481_v16 = vpack.i.bf16 %v434_v7, %v433_v13 }
  0x96   :  { %v508_v17 = vadd.f32 %v507_v15, %v506_v11  ;;  %v140_v18 = vpop.f32.mrf.mxu0 }
  0x97   :  { %2028 = vperm.xlu0 %2009, %v2481_v16   ;;  %2023 = vperm.xlu2 %2011, %v2472_v9   ;;  %v141_v20 = vadd.f32 %v2430_v47, %v140_v18 }
  0x98   :  { %v510_v19 = vadd.f32 %v509_v14, %v508_v17 }
  0x99   :  { %v160_v22 = vmax.f32 %v141_v20, 0.0 }
  0x9a   :  { %v511_v21 = vrot.slane %v510_v19, 4 }
  0x9b   :  { %1900 = vmatmul.msk.f32.gmra.mxu1 %vm43_vm2, %v160_v22 }
  0x9c   :  { %v512_v23 = vadd.f32 %v511_v21, %v510_v19 }
  0x9d   :  { %440 = vxpose.xlu1.b32.cont [5/8] (short) (narrow) %v431_v62, 8 }
  0x9e   :  { %v513_v24 = vrot.slane %v512_v23, 2  ;;  %v143_v25 = vpop.f32.mrf.mxu0 }
  0x9f   :  { %2032 = vset.pattern.permute.xlu0 %v2191_v26  ;;  %v144_v29 = vadd.f32 %v2430_v47, %v143_v25  ;;  %2081 = vset.pattern.permute.xlu2 %v2192_v30 }
  0xa0   :  { %v514_v28 = vadd.f32 %v513_v24, %v512_v23  ;;  %2034 = vperm.xlu0 %2032, %v2435_v49   ;;  %2083 = vperm.xlu2 %2081, %v2453_v61  }
  0xa1   :  { %v161_v32 = vmax.f32 %v144_v29, 0.0 }
  0xa2   :  { %v515_v31 = vrot.slane %v514_v28, 1 }
  0xa3   :  { %1901 = vmatmul.msk.f32.gmra.mxu1 %vm43_vm2, %v161_v32 }
  0xa4   :  { %v516_v34 = vadd.f32 %v515_v31, %v514_v28 }
  0xa5   :  { %441 = vxpose.xlu1.b32.cont [6/8] (short) (narrow) %v432_v1, 8  ;;  %v2194_v1 = vmov 4  }
  0xa6   :  { %v517_v35 = vadd.f32 %v516_v34, %v494_v33  ;;  %v146_v36 = vpop.f32.mrf.mxu0 }
  0xa7   :  { %v147_v37 = vadd.f32 %v2430_v47, %v146_v36 }
  0xa8   :  { %519 = vst.msk [vmem:[#allocation4] sm:$0x1] %vm69_vm5, %v517_v35  ;;  %2039 = vperm.xlu0 %2032, %v2453_v61   ;;  %2120 = vset.pattern.permute.xlu2 %v2189_v4 }
  0xa9   :  { %v162_v38 = vmax.f32 %v147_v37, 0.0 }
  0xab   :  { %1902 = vmatmul.msk.f32.gmra.mxu1 %vm43_vm2, %v162_v38 }
  0xad   :  { %442 = vxpose.xlu1.b32.cont [7/8] (short) (narrow) %v433_v13, 8 }
  0xae   :  { %v149_v39 = vpop.f32.mrf.mxu0 }
  0xaf   :  { %v2498_v40 = vld [vmem:[#allocation4] sm:$0x1]  ;;  %v150_v41 = vadd.f32 %v2430_v47, %v149_v39 }
  0xb0   :  { %2044 = vperm.xlu0 %2032, %v2472_v9   ;;  %v2503_v42 = vmax.f32 %v2498_v40, 2.0  ;;  %vm1123_vm15 = vcmp.gt.f32.partialorder %v2498_v40, 1.5 }
  0xb1   :  { %v163_v43 = vmax.f32 %v150_v41, 0.0 }
  0xb2   :  { %v1955_v44 = vadd.f32 -1.0, %v2503_v42  ;;  %vm1132_vm8 = vweird.f32 %v2503_v42  ;;  %v1136_v10 = vand.u32 2147483647, %v2503_v42 }
  0xb3   :  { %1903 = vmatmul.msk.f32.gmra.mxu1 %vm43_vm2, %v163_v43 }
  0xb4   :  { %2131 = vrcp.f32 %v1955_v44  ;;  %v1153_v54 = vand.u32 2147483648, %v1955_v44  ;;  %vm1147_vm4 = vweird.f32 %v1955_v44  ;;  %v1151_v56 = vand.u32 2147483647, %v1955_v44 }
  0xb5   :  { %443 = vxpose.xlu1.b32.end [8/8] (short) (narrow) %v434_v7, 8  ;;  %2133 = vrcp.f32 %v2503_v42  ;;  %vm1137_vm11 = vcmp.eq.f32.partialorder %v1136_v10, 8.507059e+37 }
  0xb6   :  { %v152_v45 = vpop.f32.mrf.mxu0  ;;  %v1154_v60 = vor.u32 1.1754944e-38, %v1153_v54  ;;  %vm1152_vm7 = vcmp.eq.f32.partialorder %v1151_v56, 8.507059e+37 }
  0xb7   :  { %v153_v46 = vadd.f32 %v2430_v47, %v152_v45 }
  0xb8   :  { %2049 = vperm.xlu0 %2032, %v2481_v16  }
  0xb9   :  { %v164_v51 = vmax.f32 %v153_v46, 0.0 }
  0xba   :  { %v2132_v50 = vpop.eup %2131 }
  0xbb   :  { %v1143_v52 = vmul.f32 %v2132_v50, %v1955_v44  ;;  %1904 = vmatmul.msk.f32.gmra.mxu1 %vm43_vm2, %v164_v51  ;;  %vm1148_vm13 = vweird.f32 %v2132_v50  ;;  %v2134_v2 = vpop.eup %2133 }
  0xbc   :  { %vm1149_vm5 = vmor %vm1147_vm4, %vm1148_vm13  ;;  %v1128_v3 = vmul.f32 %v2134_v2, %v2503_v42  ;;  %vm1133_vm9 = vweird.f32 %v2134_v2 }
  0xbd   :  { %v1144_v55 = vsub.f32 1.0, %v1143_v52  ;;  %vm1134_vm10 = vmor %vm1132_vm8, %vm1133_vm9 }
  0xbe   :  { %v1129_v6 = vsub.f32 1.0, %v1128_v3 }
  0xbf   :  { %v1145_v57 = vmul.f32 %v2132_v50, %v1144_v55 }
  0xc0   :  { %2053 = vset.pattern.permute.xlu0 %v2193_v59  ;;  %v1130_v7 = vmul.f32 %v2134_v2, %v1129_v6 }
  0xc1   :  { %2055 = vperm.xlu0 %2053, %v2435_v49   ;;  %v1146_v62 = vadd.f32 %v2132_v50, %v1145_v57 }
  0xc3   :  { %v1150_v63 = vsel %vm1149_vm5, %v2132_v50, %v1146_v62  ;;  %1905 = vmatmul.msk.f32.gmra.mxu1 %vm43_vm2, %v165_v58 }
  0xc4   :  { %v1155_v47 = vsel %vm1152_vm7, %v1154_v60, %v1150_v63 }
  0xc5   :  { %v2514_v0 = vperm.slane %v1155_v47, 0 }
  0xc7   :  { %1252 = vperm.xlu2 %2120, %v2514_v0  }
  0xc9   :  { %2060 = vperm.xlu0 %2053, %v2453_v61  }
  0xd1   :  { %2065 = vperm.xlu0 %2053, %v2472_v9  }
  0xd9   :  { %2075 = vset.pattern.permute.xlu0 %v2192_v30 }
  0xda   :  { %2077 = vperm.xlu0 %2075, %v2435_v49  }
  0xe1   :  { %v2625_v45 = vpop.permute.xlu2 %2013 }
  0xe2   :  { %2088 = vperm.xlu0 %2075, %v2472_v9  }
  0xe9   :  { %v2019_v52 = vpop.permute.xlu2 %2018 }
  0xea   :  { %2093 = vperm.xlu0 %2075, %v2481_v16   ;;  %v2021_v3 = vunpack.i.h.bf16 %v2019_v52 }
  0xf1   :  { %v2024_v56 = vpop.permute.xlu2 %2023 }
  0xf2   :  { %2097 = vset.pattern.permute.xlu0 %v2194_v1  ;;  %v2026_v62 = vunpack.i.h.bf16 %v2024_v56  ;;  %v2025_v47 = vunpack.i.l.bf16 %v2024_v56 }
  0xf3   :  { %2099 = vperm.xlu0 %2097, %v2435_v49   ;;  %v1138_v49 = vand.u32 2147483648, %v2503_v42 }
  0xf5   :  { %v1139_v13 = vor.u32 1.1754944e-38, %v1138_v49 }
  0xfb   :  { %2104 = vperm.xlu0 %2097, %v2453_v61   ;;  %v1131_v61 = vadd.f32 %v2134_v2, %v1130_v7  ;;  %v2020_v7 = vunpack.i.l.bf16 %v2019_v52 }
  0xfd   :  { %v1135_v15 = vsel %vm1134_vm10, %v2134_v2, %v1131_v61 }
  0xfe   :  { %v1140_v17 = vsel %vm1137_vm11, %v1139_v13, %v1135_v15 }
  0xff   :  { %v2556_v21 = vperm.slane %v1140_v17, 0  ;;  %v2015_v17 = vunpack.i.l.bf16 %v2625_v45 }
 0x103   :  { %2109 = vperm.xlu0 %2097, %v2472_v9  }
 0x108   :  { %2069 = vset.pattern.permute.xlu1 %v2193_v59  ;;  %v216_v11 = vpop.f32.mrf.mxu1 }
 0x109   :  { %v2540_v12 = vpop.permute.xlu0 %2028  ;;  %v217_v9 = vadd.f32 %v2534_v8, %v216_v11  ;;  %v2016_v11 = vunpack.i.h.bf16 %v2625_v45 }
 0x10a   :  { %v2031_v54 = vunpack.i.h.bf16 %v2540_v12  ;;  %v2030_v57 = vunpack.i.l.bf16 %v2540_v12 }
 0x10b   :  { %2114 = vperm.xlu0 %2097, %v2481_v16   ;;  %v2544_v14 = vmax.f32 %v217_v9, 0.0 }
 0x10d   :  { %248 = vst.msk [vmem:[%s2956_s10] sm:$0xff] %vm43_vm2, %v2544_v14  ;;  %572 = vxpose.xlu2.b32.start [1/8] (short) (narrow) %v2544_v14, 32 }
 0x10f   :  { %2071 = vperm.xlu1 %2069, %v2481_v16  }
 0x110   :  { %v219_v18 = vpop.f32.mrf.mxu1 }
 0x111   :  { %v220_v19 = vadd.f32 %v2534_v8, %v219_v18 }
 0x112   :  { %v2554_v20 = vpop.permute.xlu0 %2034 }
 0x113   :  { %2118 = vset.pattern.permute.xlu0 %v2189_v4  ;;  %v2559_v22 = vmax.f32 %v220_v19, 0.0 }
 0x114   :  { %1238 = vperm.xlu0 %2118, %v2556_v21  }
 0x115   :  { %249 = vst.msk [vmem:[%s2956_s10 + $0x8] sm:$0xff] %vm43_vm2, %v2559_v22  ;;  %573 = vxpose.xlu2.b32.cont [2/8] (short) (narrow) %v2559_v22, 32  ;;  %v561_v18 = vmul.f32 %v2016_v11, %v2559_v22 }
 0x117   :  { %2119 = vset.pattern.permute.xlu1 %v2191_v26 }
 0x118   :  { %1369 = vperm.xlu1 %2119, %v2556_v21   ;;  %v222_v16 = vpop.f32.mrf.mxu1 }
 0x119   :  { %v223_v23 = vadd.f32 %v2534_v8, %v222_v16 }
 0x11a   :  { %v2571_v4 = vpop.permute.xlu0 %2039 }
 0x11b   :  { %v2573_v24 = vmax.f32 %v223_v23, 0.0 }
 0x11d   :  { %250 = vst.msk [vmem:[%s2956_s10 + $0x10] sm:$0xff] %vm43_vm2, %v2573_v24  ;;  %574 = vxpose.xlu2.b32.cont [3/8] (short) (narrow) %v2573_v24, 32  ;;  %v562_v12 = vmul.f32 %v2020_v7, %v2573_v24 }
 0x120   :  { %v225_v25 = vpop.f32.mrf.mxu1 }
 0x121   :  { %v226_v28 = vadd.f32 %v2534_v8, %v225_v25  ;;  %v452_v55 = vpop.trf.xlu1  ;;  %v2084_v25 = vpop.permute.xlu2 %2083 }
 0x122   :  { %v2582_v29 = vpop.permute.xlu0 %2044 }
 0x123   :  { %v2584_v31 = vmax.f32 %v226_v28, 0.0  ;;  %v2046_v52 = vunpack.i.l.bf16 %v2582_v29 }
 0x125   :  { %251 = vst.msk [vmem:[%s2956_s10 + $0x18] sm:$0xff] %vm43_vm2, %v2584_v31  ;;  %575 = vxpose.xlu2.b32.cont [4/8] (short) (narrow) %v2584_v31, 32  ;;  %v563_v49 = vmul.f32 %v2021_v3, %v2584_v31 }
 0x128   :  { %v228_v32 = vpop.f32.mrf.mxu1 }
 0x129   :  { %v229_v33 = vadd.f32 %v2534_v8, %v228_v32  ;;  %v560_v32 = vmul.f32 %v2015_v17, %v2544_v14 }
 0x12a   :  { %v2593_v34 = vpop.permute.xlu0 %2049 }
 0x12b   :  { %v2595_v35 = vmax.f32 %v229_v33, 0.0  ;;  %v2052_v9 = vunpack.i.h.bf16 %v2593_v34  ;;  %v2051_v28 = vunpack.i.l.bf16 %v2593_v34  ;;  %v256_v33 = vld [vmem:[%s2951_s5] sm:$0x1]  ;;  %v2086_v34 = vunpack.i.h.bf16 %v2084_v25 }
 0x12d   :  { %252 = vst.msk [vmem:[%s2956_s10 + $0x20] sm:$0xff] %vm43_vm2, %v2595_v35  ;;  %576 = vxpose.xlu2.b32.cont [5/8] (short) (narrow) %v2595_v35, 32  ;;  %v564_v6 = vmul.f32 %v2025_v47, %v2595_v35  ;;  %v852_v56 = vmul.f32 %v2086_v34, %v2584_v31 }
 0x130   :  { %v231_v36 = vpop.f32.mrf.mxu1 }
 0x131   :  { %v232_v37 = vadd.f32 %v2534_v8, %v231_v36 }
 0x133   :  { %v2604_v38 = vpop.permute.xlu0 %2055  ;;  %v2606_v39 = vmax.f32 %v232_v37, 0.0  ;;  %v2047_v37 = vunpack.i.h.bf16 %v2582_v29  ;;  %v2037_v29 = vunpack.i.h.bf16 %v2554_v20 }
 0x135   :  { %253 = vst.msk [vmem:[%s2956_s10 + $0x28] sm:$0xff] %vm43_vm2, %v2606_v39  ;;  %577 = vxpose.xlu2.b32.cont [6/8] (short) (narrow) %v2606_v39, 32  ;;  %v565_v2 = vmul.f32 %v2026_v62, %v2606_v39 }
 0x138   :  { %v234_v41 = vpop.f32.mrf.mxu1 }
 0x139   :  { %v235_v42 = vadd.f32 %v2534_v8, %v234_v41 }
 0x13b   :  { %v2615_v43 = vpop.permute.xlu0 %2060  ;;  %v2617_v44 = vmax.f32 %v235_v42, 0.0  ;;  %v2085_v42 = vunpack.i.l.bf16 %v2084_v25 }
 0x13d   :  { %254 = vst.msk [vmem:[%s2956_s10 + $0x30] sm:$0xff] %vm43_vm2, %v2617_v44  ;;  %578 = vxpose.xlu2.b32.cont [7/8] (short) (narrow) %v2617_v44, 32  ;;  %v566_v63 = vmul.f32 %v2030_v57, %v2617_v44  ;;  %v691_v41 = vmul.f32 %v2051_v28, %v2617_v44  ;;  %v2041_v57 = vunpack.i.l.bf16 %v2571_v4  ;;  %v851_v62 = vmul.f32 %v2085_v42, %v2573_v24 }
 0x140   :  { %v237_v46 = vpop.f32.mrf.mxu1 }
 0x141   :  { %v238_v48 = vadd.f32 %v2534_v8, %v237_v46 }
 0x143   :  { %v2628_v50 = vpop.permute.xlu0 %2065  ;;  %v2630_v51 = vmax.f32 %v238_v48, 0.0  ;;  %v2042_v48 = vunpack.i.h.bf16 %v2571_v4  ;;  %v687_v4 = vmul.f32 %v2041_v57, %v2573_v24 }
 0x144   :  { %v2067_v25 = vunpack.i.l.bf16 %v2628_v50 }
 0x145   :  { %255 = vst.msk [vmem:[%s2956_s10 + $0x38] sm:$0xff] %vm43_vm2, %v2630_v51  ;;  %1906 = vmatpush.xpose.msk.msra.mxu2 %vm43_vm2, %v2630_v51  ;;  %480 = vmatpush.msra.mxu3 %v2630_v51  ;;  %v567_v60 = vmul.f32 %v2031_v54, %v2630_v51  ;;  %v692_v16 = vmul.f32 %v2052_v9, %v2630_v51 }
 0x146   :  { %579 = vxpose.xlu2.b32.end [8/8] (short) (narrow) %v2630_v51, 32  ;;  %v690_v54 = vmul.f32 %v2047_v37, %v2606_v39 }
 0x147   :  { %481 = vmatpush.msra.mxu3 %v2617_v44 }
 0x149   :  { %1907 = vmatpush.xpose.msk.msra.mxu2 %vm43_vm2, %v2617_v44  ;;  %482 = vmatpush.msra.mxu3 %v2606_v39 }
 0x14b   :  { %483 = vmatpush.msra.mxu3 %v2595_v35 }
 0x14c   :  { %v2645_v53 = vpop.permute.xlu0 %2077 }
 0x14d   :  { %1908 = vmatpush.xpose.msk.msra.mxu2 %vm43_vm2, %v2606_v39  ;;  %484 = vmatpush.msra.mxu3 %v2584_v31 }
 0x14f   :  { %485 = vmatpush.msra.mxu3 %v2573_v24 }
 0x151   :  { %1909 = vmatpush.xpose.msk.msra.mxu2 %vm43_vm2, %v2595_v35  ;;  %486 = vmatpush.msra.mxu3 %v2559_v22 }
 0x153   :  { %487 = vmatpush.msra.mxu3 %v2544_v14 }
 0x154   :  { %v2089_v58 = vpop.permute.xlu0 %2088  ;;  %1924 = vmatmul.msk.f32.vlgmr.msra.gmra.mxu3 %vm468_vm12, %v452_v55  ;;  %v2080_v55 = vunpack.i.h.bf16 %v2645_v53 }
 0x155   :  { %624 = vmatpush.msrb.mxu3 %v567_v60  ;;  %1910 = vmatpush.xpose.msk.msra.mxu2 %vm43_vm2, %v2584_v31  ;;  %v2091_v13 = vunpack.i.h.bf16 %v2089_v58  ;;  %v2090_v19 = vunpack.i.l.bf16 %v2089_v58  ;;  %v689_v58 = vmul.f32 %v2046_v52, %v2595_v35  ;;  %v2079_v60 = vunpack.i.l.bf16 %v2645_v53 }
 0x156   :  { %v850_v47 = vmul.f32 %v2080_v55, %v2559_v22  ;;  %v2057_v52 = vunpack.i.l.bf16 %v2604_v38 }
 0x157   :  { %625 = vmatpush.msrb.mxu3 %v566_v63  ;;  %v854_v36 = vmul.f32 %v2091_v13, %v2606_v39  ;;  %v853_v46 = vmul.f32 %v2090_v19, %v2595_v35  ;;  %v688_v63 = vmul.f32 %v2042_v48, %v2584_v31  ;;  %v849_v53 = vmul.f32 %v2079_v60, %v2544_v14 }
 0x159   :  { %626 = vmatpush.msrb.mxu3 %v565_v2  ;;  %1911 = vmatpush.xpose.msk.msra.mxu2 %vm43_vm2, %v2573_v24  ;;  %v2036_v2 = vunpack.i.l.bf16 %v2554_v20 }
 0x15b   :  { %627 = vmatpush.msrb.mxu3 %v564_v6  ;;  %v686_v6 = vmul.f32 %v2037_v29, %v2559_v22  ;;  %v685_v7 = vmul.f32 %v2036_v2, %v2544_v14  ;;  %v263_v2 = vperm.slane %v2528_v5, 0 }
 0x15c   :  { %v2094_v8 = vpop.permute.xlu0 %2093 }
 0x15d   :  { %v2096_v61 = vunpack.i.h.bf16 %v2094_v8  ;;  %v2095_v10 = vunpack.i.l.bf16 %v2094_v8  ;;  %628 = vmatpush.msrb.mxu3 %v563_v49  ;;  %1912 = vmatpush.xpose.msk.msra.mxu2 %vm43_vm2, %v2559_v22 }
 0x15f   :  { %v856_v15 = vmul.f32 %v2096_v61, %v2630_v51  ;;  %629 = vmatpush.msrb.mxu3 %v562_v12  ;;  %v855_v23 = vmul.f32 %v2095_v10, %v2617_v44 }
 0x161   :  { %870 = vmatpush.msrb.mxu0 %v856_v15  ;;  %630 = vmatpush.msrb.mxu3 %v561_v18  ;;  %v2068_v18 = vunpack.i.h.bf16 %v2628_v50  ;;  %v771_v50 = vmul.f32 %v2067_v25, %v2595_v35  ;;  %v569_v25 = vld [vmem:[#allocation2 + $0x8] sm:$0xff] }
 0x162   :  { %1913 = vmatpush.xpose.msk.msra.mxu2 %vm43_vm2, %v2544_v14 }
 0x163   :  { %871 = vmatpush.msrb.mxu0 %v855_v23  ;;  %631 = vmatpush.msrb.mxu3 %v560_v32  ;;  %v772_v37 = vmul.f32 %v2068_v18, %v2606_v39 }
 0x165   :  { %v2688_v45 = vpop.permute.xlu0 %2099  ;;  %1914 = vmatmul.msk.f32.vlgmr.msra.gmra.mxu2 %vm43_vm2, %v256_v33  ;;  %872 = vmatpush.msrb.mxu0 %v854_v36  ;;  %v2063_v36 = vunpack.i.h.bf16 %v2615_v43 }
 0x166   :  { %706 = vmatpush.msrb.mxu2 %v692_v16  ;;  %v2101_v42 = vunpack.i.l.bf16 %v2688_v45 }
 0x167   :  { %873 = vmatpush.msrb.mxu0 %v853_v46  ;;  %v2058_v46 = vunpack.i.h.bf16 %v2604_v38  ;;  %v435_v38 = vld [vmem:[#allocation3] sm:$0xff] }
 0x168   :  { %707 = vmatpush.msrb.mxu2 %v691_v41  ;;  %v2102_v41 = vunpack.i.h.bf16 %v2688_v45 }
 0x169   :  { %874 = vmatpush.msrb.mxu0 %v852_v56  ;;  %v768_v45 = vmul.f32 %v2058_v46, %v2559_v22 }
 0x16a   :  { %708 = vmatpush.msrb.mxu2 %v690_v54  ;;  %v932_v48 = vmul.f32 %v2102_v41, %v2559_v22  ;;  %v767_v54 = vmul.f32 %v2057_v52, %v2544_v14 }
 0x16b   :  { %875 = vmatpush.msrb.mxu0 %v851_v62 }
 0x16c   :  { %709 = vmatpush.msrb.mxu2 %v689_v58 }
 0x16d   :  { %v2105_v3 = vpop.permute.xlu0 %2104  ;;  %876 = vmatpush.msrb.mxu0 %v850_v47 }
 0x16e   :  { %710 = vmatpush.msrb.mxu2 %v688_v63  ;;  %v2107_v19 = vunpack.i.h.bf16 %v2105_v3  ;;  %v2106_v28 = vunpack.i.l.bf16 %v2105_v3  ;;  %v313_v3 = vld [vmem:[%s2953_s7] sm:$0x1]  ;;  %s2195_s7 = smov 127  }
 0x16f   :  { %877 = vmatpush.msrb.mxu0 %v849_v53 }
 0x170   :  { %711 = vmatpush.msrb.mxu2 %v687_v4  ;;  %v934_v34 = vmul.f32 %v2107_v19, %v2584_v31 }
 0x172   :  { %712 = vmatpush.msrb.mxu2 %v686_v6 }
 0x174   :  { %713 = vmatpush.msrb.mxu2 %v685_v7 }
 0x175   :  { %v2110_v20 = vpop.permute.xlu0 %2109 }
 0x176   :  { %994 = vmatpush.msra.mxu2 %v2630_v51  ;;  %v2112_v10 = vunpack.i.h.bf16 %v2110_v20  ;;  %v2111_v9 = vunpack.i.l.bf16 %v2110_v20 }
 0x178   :  { %995 = vmatpush.msra.mxu2 %v2617_v44  ;;  %v936_v16 = vmul.f32 %v2112_v10, %v2606_v39  ;;  %v935_v32 = vmul.f32 %v2111_v9, %v2595_v35 }
 0x17a   :  { %996 = vmatpush.msra.mxu2 %v2606_v39  ;;  %v770_v39 = vmul.f32 %v2063_v36, %v2584_v31 }
 0x17c   :  { %997 = vmatpush.msra.mxu2 %v2595_v35  ;;  %v931_v35 = vmul.f32 %v2101_v42, %v2544_v14 }
 0x17d   :  { %v2115_v8 = vpop.permute.xlu0 %2114 }
 0x17e   :  { %998 = vmatpush.msra.mxu2 %v2584_v31  ;;  %v2117_v49 = vunpack.i.h.bf16 %v2115_v8  ;;  %v2116_v61 = vunpack.i.l.bf16 %v2115_v8  ;;  %v2741_v31 = vpop.permute.xlu2 %1252 }
 0x180   :  { %999 = vmatpush.msra.mxu2 %v2573_v24  ;;  %v938_v11 = vmul.f32 %v2117_v49, %v2630_v51  ;;  %v937_v13 = vmul.f32 %v2116_v61, %v2617_v44  ;;  %v2789_v61 = vsel %vm1123_vm15, 1.0, %v2190_v27 }
 0x181   :  { %v2072_v12 = vpop.permute.xlu1 %2071 }
 0x182   :  { %1000 = vmatpush.msra.mxu2 %v2559_v22  ;;  %v2074_v15 = vunpack.i.h.bf16 %v2072_v12  ;;  %v2073_v17 = vunpack.i.l.bf16 %v2072_v12  ;;  %952 = vmatpush.msra.mxu1 %v938_v11  ;;  %v568_v12 = vld [vmem:[#allocation2] sm:$0xff] }
 0x184   :  { %1001 = vmatpush.msra.mxu2 %v2544_v14  ;;  %v774_v23 = vmul.f32 %v2074_v15, %v2630_v51  ;;  %953 = vmatpush.msra.mxu1 %v937_v13  ;;  %v773_v33 = vmul.f32 %v2073_v17, %v2617_v44  ;;  %v2062_v51 = vunpack.i.l.bf16 %v2615_v43  ;;  %v933_v44 = vmul.f32 %v2106_v28, %v2573_v24  ;;  %v694_v13 = vld [vmem:[#allocation2 + $0x20] sm:$0xff] }
 0x186   :  { %788 = vmatpush.msra.mxu3 %v774_v23  ;;  %954 = vmatpush.msra.mxu1 %v936_v16  ;;  %v769_v43 = vmul.f32 %v2062_v51, %v2573_v24  ;;  %v2786_v49 = vpop.permute.xlu0 %1238 }
 0x188   :  { %789 = vmatpush.msra.mxu3 %v773_v33  ;;  %955 = vmatpush.msra.mxu1 %v935_v32  ;;  %v695_v32 = vld [vmem:[#allocation2 + $0x28] sm:$0xff] }
 0x18a   :  { %790 = vmatpush.msra.mxu3 %v772_v37  ;;  %956 = vmatpush.msra.mxu1 %v934_v34  ;;  %v2782_v8 = vpop.permute.xlu1 %1369 }
 0x18c   :  { %791 = vmatpush.msra.mxu3 %v771_v50  ;;  %957 = vmatpush.msra.mxu1 %v933_v44  ;;  %v570_v50 = vld [vmem:[#allocation2 + $0x10] sm:$0xff] }
 0x18d   :  { %v696_v44 = vld [vmem:[#allocation2 + $0x30] sm:$0xff] }
 0x18e   :  { %792 = vmatpush.msra.mxu3 %v770_v39  ;;  %958 = vmatpush.msra.mxu1 %v932_v48 }
 0x190   :  { %793 = vmatpush.msra.mxu3 %v769_v43  ;;  %959 = vmatpush.msra.mxu1 %v931_v35  ;;  %v571_v35 = vld [vmem:[#allocation2 + $0x18] sm:$0xff] }
 0x192   :  { %794 = vmatpush.msra.mxu3 %v768_v45  ;;  %v697_v45 = vld [vmem:[#allocation2 + $0x38] sm:$0xff] }
 0x194   :  { %795 = vmatpush.msra.mxu3 %v767_v54  ;;  %v858_v54 = vld [vmem:[#allocation2 + $0x60] sm:$0xff] }
 0x1a7   :  { %v588_v55 = vpop.trf.xlu2 }
 0x1a8   :  { %1925 = vmatmul.msk.f32.vlgmr.msrb.gmra.mxu3 %vm468_vm12, %v588_v55  ;;  %1929 = vmatmul.msk.f32.vlgmr.msrb.gmra.mxu2 %vm468_vm12, %v588_v55 }
 0x1a9   :  { %1937 = vmatmul.msk.f32.vlgmr.msrb.gmra.mxu0 %vm468_vm12, %v588_v55  ;;  %1941 = vmatmul.msk.f32.vlgmr.msra.gmra.mxu1 %vm468_vm12, %v588_v55 }
 0x1af   :  { %v589_v24 = vpop.trf.xlu2 }
 0x1b0   :  { %1926 = vmatmul.msk.f32.gmra.mxu3 %vm468_vm12, %v589_v24  ;;  %1930 = vmatmul.msk.f32.gmra.mxu2 %vm468_vm12, %v589_v24 }
 0x1b1   :  { %1938 = vmatmul.msk.f32.gmra.mxu0 %vm468_vm12, %v589_v24  ;;  %1942 = vmatmul.msk.f32.gmra.mxu1 %vm468_vm12, %v589_v24 }
 0x1b7   :  { %v590_v14 = vpop.trf.xlu2 }
 0x1b8   :  { %1927 = vmatmul.msk.f32.gmra.mxu3 %vm468_vm12, %v590_v14  ;;  %1931 = vmatmul.msk.f32.gmra.mxu2 %vm468_vm12, %v590_v14 }
 0x1b9   :  { %1939 = vmatmul.msk.f32.gmra.mxu0 %vm468_vm12, %v590_v14  ;;  %1943 = vmatmul.msk.f32.gmra.mxu1 %vm468_vm12, %v590_v14 }
 0x1bf   :  { %v591_v22 = vpop.trf.xlu2 }
 0x1c0   :  { %1928 = vmatmul.msk.f32.gmra.mxu3 %vm468_vm12, %v591_v22  ;;  %1932 = vmatmul.msk.f32.gmra.mxu2 %vm468_vm12, %v591_v22 }
 0x1c1   :  { %1940 = vmatmul.msk.f32.gmra.mxu0 %vm468_vm12, %v591_v22  ;;  %1944 = vmatmul.msk.f32.gmra.mxu1 %vm468_vm12, %v591_v22 }
 0x1c8   :  { %1933 = vmatmul.msk.f32.vlgmr.msra.gmra.mxu3 %vm468_vm12, %v588_v55  ;;  %1945 = vmatmul.msk.f32.vlgmr.msra.gmra.mxu2 %vm468_vm12, %v588_v55 }
 0x1d0   :  { %1934 = vmatmul.msk.f32.gmra.mxu3 %vm468_vm12, %v589_v24  ;;  %1946 = vmatmul.msk.f32.gmra.mxu2 %vm468_vm12, %v589_v24 }
 0x1d7   :  { %v489_v56 = vpop.f32.mrf.mxu3 }
 0x1d8   :  { %v492_v57 = vadd.f32 %v489_v56, %v435_v38  ;;  %1935 = vmatmul.msk.f32.gmra.mxu3 %vm468_vm12, %v590_v14  ;;  %1947 = vmatmul.msk.f32.gmra.mxu2 %vm468_vm12, %v590_v14  ;;  %v940_v56 = vld [vmem:[#allocation2 + $0x80] sm:$0xff] }
 0x1da   :  { %493 = vst.msk [vmem:[#allocation3] sm:$0xff] %vm43_vm2, %v492_v57 }
 0x1e0   :  { %1936 = vmatmul.msk.f32.gmra.mxu3 %vm468_vm12, %v591_v22  ;;  %1948 = vmatmul.msk.f32.gmra.mxu2 %vm468_vm12, %v591_v22 }
 0x1e1   :  { %v1027_v58 = vld [vmem:[#allocation3] sm:$0xff] }
 0x1e2   :  { %1156 = vxpose.xlu1.b32.start.end [1/1] (short) (narrow) %v1027_v58, 32  ;;  %1956 = vmatpush.msk.msra.mxu0 %vm113_vm0, %v1027_v58  ;;  %v1424_v60 = vrot.slane %v1027_v58, 2  ;;  %v1696_v62 = vrot.slane %v1027_v58, 4  ;;  %v1029_v29 = vrot.slane %v1027_v58, 5  ;;  %v1287_v63 = vrot.slane %v1027_v58, 1 }
 0x1e3   :  { %v1560_v47 = vrot.slane %v1027_v58, 3 }
 0x1e4   :  { %1426 = vxpose.xlu2.b32.start.end [1/1] (short) (narrow) %v1424_v60, 32  ;;  %1966 = vmatpush.msk.msrb.mxu2 %vm113_vm0, %v1424_v60 }
 0x1e5   :  { %1976 = vmatpush.msk.msrb.mxu0 %vm113_vm0, %v1696_v62  ;;  %1031 = vxpose.xlu0.b32.start.end [1/1] (short) (narrow) %v1029_v29, 32 }
 0x1e6   :  { %1949 = vmatpush.msk.msrb.mxu1 %vm113_vm0, %v1029_v29  ;;  %1984 = vmatpush.msk.msrb.mxu3 %vm113_vm0, %v1029_v29  ;;  %v776_v29 = vld [vmem:[#allocation2 + $0x40] sm:$0xff] }
 0x1e8   :  { %1961 = vmatpush.msk.msra.mxu1 %vm113_vm0, %v1287_v63  ;;  %1971 = vmatpush.msk.msra.mxu3 %vm113_vm0, %v1560_v47  ;;  %v308_v4 = vpop.f32.mrf.mxu2  ;;  %vm1063_vm0 = vcmask 7168  }
 0x1e9   :  { %v309_v53 = vadd.f32 %v308_v4, %v263_v2 }
 0x1eb   :  { %v314_v6 = vsub.f32 %v309_v53, %v313_v3  ;;  %312 = vst.msk [vmem:[#allocation7] sm:$0x1] %vm311_vm14, %v309_v53 }
 0x1ec   :  { %1863 = dma.vmem_to_hbm [thread:$0]  %s1859_s6, 16, %s1861_s23, [#allocation8]  }
 0x1ed   :  { %v316_v7 = vmul.f32 %v314_v6, %v314_v6 }
 0x1ef   :  { %v317_v20 = vsel %vm311_vm14, %v316_v7, 0.0  ;;  %v941_v7 = vld [vmem:[#allocation2 + $0x88] sm:$0xff] }
 0x202   :  { %1289 = vxpose.xlu1.b32.start.end [1/1] (short) (narrow) %v1287_v63, 32  ;;  %v982_v63 = vld [vmem:[#allocation2 + $0xa0] sm:$0xff] }
 0x204   :  { %1698 = vxpose.xlu2.b32.start.end [1/1] (short) (narrow) %v1696_v62, 32 }
 0x222   :  { %1562 = vxpose.xlu1.b32.start.end [1/1] (short) (narrow) %v1560_v47, 32  ;;  %v859_v47 = vld [vmem:[#allocation2 + $0x68] sm:$0xff] }
 0x226   :  { %v879_v55 = vpop.f32.mrf.mxu0  ;;  %v961_v24 = vpop.f32.mrf.mxu1 }
 0x227   :  { %v891_v38 = vadd.f32 %v879_v55, %v858_v54  ;;  %v973_v62 = vadd.f32 %v961_v24, %v940_v56 }
 0x229   :  { %895 = vst.msk [vmem:[#allocation2 + $0x60] sm:$0xff] %vm43_vm2, %v891_v38 }
 0x22a   :  { %977 = vst.msk [vmem:[#allocation2 + $0x80] sm:$0xff] %vm43_vm2, %v973_v62 }
 0x22b   :  { %v633_v9 = vpop.f32.mrf.mxu3  ;;  %v715_v15 = vpop.f32.mrf.mxu2 }
 0x22c   :  { %v645_v18 = vadd.f32 %v633_v9, %v568_v12  ;;  %v727_v19 = vadd.f32 %v715_v15, %v694_v13 }
 0x22e   :  { %649 = vst.msk [vmem:[#allocation2] sm:$0xff] %vm43_vm2, %v645_v18  ;;  %v882_v2 = vpop.f32.mrf.mxu0  ;;  %v964_v4 = vpop.f32.mrf.mxu1  ;;  %v942_v18 = vld [vmem:[#allocation2 + $0x90] sm:$0xff] }
 0x22f   :  { %731 = vst.msk [vmem:[#allocation2 + $0x20] sm:$0xff] %vm43_vm2, %v727_v19  ;;  %v892_v6 = vadd.f32 %v882_v2, %v859_v47 }
 0x231   :  { %896 = vst.msk [vmem:[#allocation2 + $0x68] sm:$0xff] %vm43_vm2, %v892_v6 }
 0x233   :  { %v636_v28 = vpop.f32.mrf.mxu3  ;;  %v718_v33 = vpop.f32.mrf.mxu2 }
 0x234   :  { %v646_v37 = vadd.f32 %v636_v28, %v569_v25  ;;  %v728_v41 = vadd.f32 %v718_v33, %v695_v32  ;;  %v778_v32 = vld [vmem:[#allocation2 + $0x50] sm:$0xff] }
 0x236   :  { %650 = vst.msk [vmem:[#allocation2 + $0x8] sm:$0xff] %vm43_vm2, %v646_v37  ;;  %v885_v12 = vpop.f32.mrf.mxu0  ;;  %v967_v9 = vpop.f32.mrf.mxu1  ;;  %v861_v37 = vld [vmem:[#allocation2 + $0x78] sm:$0xff] }
 0x237   :  { %732 = vst.msk [vmem:[#allocation2 + $0x28] sm:$0xff] %vm43_vm2, %v728_v41 }
 0x23b   :  { %v639_v42 = vpop.f32.mrf.mxu3  ;;  %v721_v46 = vpop.f32.mrf.mxu2 }
 0x23c   :  { %v647_v48 = vadd.f32 %v639_v42, %v570_v50  ;;  %v729_v52 = vadd.f32 %v721_v46, %v696_v44  ;;  %v943_v50 = vld [vmem:[#allocation2 + $0x98] sm:$0xff] }
 0x23e   :  { %651 = vst.msk [vmem:[#allocation2 + $0x10] sm:$0xff] %vm43_vm2, %v647_v48  ;;  %v970_v46 = vpop.f32.mrf.mxu1  ;;  %v779_v48 = vld [vmem:[#allocation2 + $0x58] sm:$0xff] }
 0x23f   :  { %733 = vst.msk [vmem:[#allocation2 + $0x30] sm:$0xff] %vm43_vm2, %v729_v52  ;;  %v985_v52 = vld [vmem:[#allocation2 + $0xb8] sm:$0xff] }
 0x243   :  { %v642_v14 = vpop.f32.mrf.mxu3  ;;  %v724_v22 = vpop.f32.mrf.mxu2 }
 0x244   :  { %v648_v58 = vadd.f32 %v642_v14, %v571_v35  ;;  %v730_v60 = vadd.f32 %v724_v22, %v697_v45 }
 0x246   :  { %652 = vst.msk [vmem:[#allocation2 + $0x18] sm:$0xff] %vm43_vm2, %v648_v58 }
 0x247   :  { %734 = vst.msk [vmem:[#allocation2 + $0x38] sm:$0xff] %vm43_vm2, %v730_v60 }
 0x24b   :  { %v797_v3 = vpop.f32.mrf.mxu3  ;;  %v1003_v53 = vpop.f32.mrf.mxu2 }
 0x24c   :  { %2122 = vset.pattern.permute.xlu0 %v2193_v59 }
 0x253   :  { %v800_v13 = vpop.f32.mrf.mxu3  ;;  %v1006_v15 = vpop.f32.mrf.mxu2 }
 0x25b   :  { %v803_v33 = vpop.f32.mrf.mxu3 }
 0x25c   :  { %v811_v41 = vadd.f32 %v803_v33, %v778_v32  ;;  %v1233_v33 = vld [vmem:[#allocation2 + $0x10] sm:$0xff] }
 0x25e   :  { %815 = vst.msk [vmem:[#allocation2 + $0x50] sm:$0xff] %vm43_vm2, %v811_v41 }
 0x263   :  { %v806_v35 = vpop.f32.mrf.mxu3 }
 0x264   :  { %v812_v45 = vadd.f32 %v806_v35, %v779_v48 }
 0x265   :  { %v1503_v32 = vld [vmem:[#allocation2 + $0x50] sm:$0xff] }
 0x266   :  { %2121 = vset.pattern.permute.xlu2 %v2191_v26  ;;  %816 = vst.msk [vmem:[#allocation2 + $0x58] sm:$0xff] %vm43_vm2, %v812_v45 }
 0x26e   :  { %318 = vadd.xlane.f32.xlu0 %v317_v20  ;;  %v809_v20 = vadd.f32 %v797_v3, %v776_v29 }
 0x270   :  { %813 = vst.msk [vmem:[#allocation2 + $0x40] sm:$0xff] %vm43_vm2, %v809_v20 }
 0x275   :  { %2123 = vset.pattern.permute.xlu1 %v2193_v59 }
 0x27d   :  { %v1442_v5 = vpop.trf.xlu2 }
 0x27e   :  { %1967 = vmatmul.msk.f32.vlgmr.msrb.gmra.mxu2 %vm1063_vm0, %v1442_v5  ;;  %v1015_v5 = vadd.f32 %v1003_v53, %v982_v63 }
 0x280   :  { %1019 = vst.msk [vmem:[#allocation2 + $0xa0] sm:$0xff] %vm43_vm2, %v1015_v5 }
 0x282   :  { %1420 = vrot.lane.b32.xlu0 %v2789_v61, %s2195_s7 }
 0x285   :  { %v1443_v26 = vpop.trf.xlu2 }
 0x286   :  { %v1172_v10 = vpop.trf.xlu1  ;;  %1968 = vmatmul.msk.f32.gmra.mxu2 %vm1063_vm0, %v1443_v26  ;;  %v974_v26 = vadd.f32 %v964_v4, %v941_v7 }
 0x287   :  { %1957 = vmatmul.msk.f32.vlgmr.msra.gmra.mxu0 %vm1063_vm0, %v1172_v10 }
 0x288   :  { %978 = vst.msk [vmem:[#allocation2 + $0x88] sm:$0xff] %vm43_vm2, %v974_v26 }
 0x289   :  { %v1047_v59 = vpop.trf.xlu0 }
 0x28a   :  { %1506 = vperm.xlu0 %2122, %v2556_v21   ;;  %1950 = vmatmul.msk.f32.vlgmr.msrb.gmra.mxu1 %vm1063_vm0, %v1047_v59  ;;  %v777_v59 = vld [vmem:[#allocation2 + $0x48] sm:$0xff] }
 0x28b   :  { %v810_v19 = vadd.f32 %v800_v13, %v777_v59  ;;  %v1107_v13 = vld [vmem:[#allocation2 + $0xa0] sm:$0xff] }
 0x28d   :  { %v1444_v40 = vpop.trf.xlu2  ;;  %814 = vst.msk [vmem:[#allocation2 + $0x48] sm:$0xff] %vm43_vm2, %v810_v19 }
 0x28e   :  { %v1173_v11 = vpop.trf.xlu1  ;;  %1969 = vmatmul.msk.f32.gmra.mxu2 %vm1063_vm0, %v1444_v40  ;;  %v983_v40 = vld [vmem:[#allocation2 + $0xa8] sm:$0xff] }
 0x28f   :  { %1958 = vmatmul.msk.f32.gmra.mxu0 %vm1063_vm0, %v1173_v11  ;;  %v860_v11 = vld [vmem:[#allocation2 + $0x70] sm:$0xff] }
 0x291   :  { %v1048_v17 = vpop.trf.xlu0 }
 0x292   :  { %1951 = vmatmul.msk.f32.vlgmr.msrb.gmra.mxu3 %vm1063_vm0, %v1048_v17  ;;  %2128 = vset.pattern.permute.xlu0 %v2194_v1  ;;  %v893_v17 = vadd.f32 %v885_v12, %v860_v11  ;;  %v1501_v12 = vld [vmem:[#allocation2 + $0x40] sm:$0xff] }
 0x294   :  { %1518 = vperm.xlu1 %2123, %v2514_v0   ;;  %897 = vst.msk [vmem:[#allocation2 + $0x70] sm:$0xff] %vm43_vm2, %v893_v17 }
 0x295   :  { %v1445_v16 = vpop.trf.xlu2 }
 0x296   :  { %v1174_v23 = vpop.trf.xlu1  ;;  %1970 = vmatmul.msk.f32.gmra.mxu2 %vm1063_vm0, %v1445_v16  ;;  %v1016_v16 = vadd.f32 %v1006_v15, %v983_v40 }
 0x297   :  { %1959 = vmatmul.msk.f32.gmra.mxu0 %vm1063_vm0, %v1174_v23  ;;  %v975_v23 = vadd.f32 %v967_v9, %v942_v18  ;;  %v1231_v9 = vld [vmem:[#allocation2] sm:$0xff] }
 0x298   :  { %1020 = vst.msk [vmem:[#allocation2 + $0xa8] sm:$0xff] %vm43_vm2, %v1016_v16  ;;  %v1502_v16 = vld [vmem:[#allocation2 + $0x48] sm:$0xff] }
 0x299   :  { %v1049_v36 = vpop.trf.xlu0  ;;  %979 = vst.msk [vmem:[#allocation2 + $0x90] sm:$0xff] %vm43_vm2, %v975_v23  ;;  %v1232_v23 = vld [vmem:[#allocation2 + $0x8] sm:$0xff] }
 0x29a   :  { %1952 = vmatmul.msk.f32.gmra.mxu3 %vm1063_vm0, %v1049_v36  ;;  %v984_v36 = vld [vmem:[#allocation2 + $0xb0] sm:$0xff] }
 0x29c   :  { %2124 = vset.pattern.permute.xlu1 %v2192_v30 }
 0x29d   :  { %1642 = vperm.xlu1 %2124, %v2556_v21   ;;  %v1714_v51 = vpop.trf.xlu2 }
 0x29e   :  { %v1175_v34 = vpop.trf.xlu1 }
 0x29f   :  { %1960 = vmatmul.msk.f32.gmra.mxu0 %vm1063_vm0, %v1175_v34  ;;  %v1009_v34 = vpop.f32.mrf.mxu2  ;;  %v1108_v40 = vld [vmem:[#allocation2 + $0xa8] sm:$0xff] }
 0x2a0   :  { %v1017_v42 = vadd.f32 %v1009_v34, %v984_v36 }
 0x2a1   :  { %v1050_v39 = vpop.trf.xlu0 }
 0x2a2   :  { %1953 = vmatmul.msk.f32.gmra.mxu3 %vm1063_vm0, %v1050_v39  ;;  %v976_v39 = vadd.f32 %v970_v46, %v943_v50  ;;  %1021 = vst.msk [vmem:[#allocation2 + $0xb0] sm:$0xff] %vm43_vm2, %v1017_v42  ;;  %v315_v42 = vld [vmem:[#allocation5] sm:$0x1] }
 0x2a4   :  { %980 = vst.msk [vmem:[#allocation2 + $0x98] sm:$0xff] %vm43_vm2, %v976_v39 }
 0x2a5   :  { %2125 = vset.pattern.permute.xlu1 %v2194_v1  ;;  %v1715_v57 = vpop.trf.xlu2 }
 0x2a6   :  { %1778 = vperm.xlu1 %2125, %v2556_v21   ;;  %v1305_v43 = vpop.trf.xlu1 }
 0x2a7   :  { %1962 = vmatmul.msk.f32.vlgmr.msra.gmra.mxu1 %vm1063_vm0, %v1305_v43  ;;  %1977 = vmatmul.msk.f32.vlgmr.msrb.gmra.mxu0 %vm1063_vm0, %v1714_v51  ;;  %v888_v51 = vpop.f32.mrf.mxu0  ;;  %v1012_v54 = vpop.f32.mrf.mxu2 }
 0x2a8   :  { %v894_v44 = vadd.f32 %v888_v51, %v861_v37  ;;  %v1018_v55 = vadd.f32 %v1012_v54, %v985_v52 }
 0x2a9   :  { %v1109_v48 = vld [vmem:[#allocation2 + $0xb0] sm:$0xff] }
 0x2aa   :  { %898 = vst.msk [vmem:[#allocation2 + $0x78] sm:$0xff] %vm43_vm2, %v894_v44 }
 0x2ab   :  { %1022 = vst.msk [vmem:[#allocation2 + $0xb8] sm:$0xff] %vm43_vm2, %v1018_v55 }
 0x2ae   :  { %2126 = vset.pattern.permute.xlu1 %v2192_v30  ;;  %v1306_v21 = vpop.trf.xlu1  ;;  %v1716_v30 = vpop.trf.xlu2 }
 0x2af   :  { %1654 = vperm.xlu1 %2126, %v2514_v0   ;;  %1963 = vmatmul.msk.f32.gmra.mxu1 %vm1063_vm0, %v1306_v21 }
 0x2b0   :  { %1978 = vmatmul.msk.f32.gmra.mxu0 %vm1063_vm0, %v1715_v57 }
 0x2b6   :  { %v1307_v10 = vpop.trf.xlu1 }
 0x2b7   :  { %2127 = vset.pattern.permute.xlu1 %v2194_v1  ;;  %1964 = vmatmul.msk.f32.gmra.mxu1 %vm1063_vm0, %v1307_v10  ;;  %v1717_v1 = vpop.trf.xlu2 }
 0x2b8   :  { %1979 = vmatmul.msk.f32.gmra.mxu0 %vm1063_vm0, %v1716_v30  ;;  %1790 = vperm.xlu1 %2127, %v2514_v0  }
 0x2be   :  { %v1308_v25 = vpop.trf.xlu1 }
 0x2bf   :  { %1965 = vmatmul.msk.f32.gmra.mxu1 %vm1063_vm0, %v1308_v25 }
 0x2c0   :  { %1980 = vmatmul.msk.f32.gmra.mxu0 %vm1063_vm0, %v1717_v1 }
 0x2c6   :  { %v1578_v28 = vpop.trf.xlu1 }
 0x2c7   :  { %1972 = vmatmul.msk.f32.vlgmr.msra.gmra.mxu3 %vm1063_vm0, %v1578_v28 }
 0x2ce   :  { %v1579_v43 = vpop.trf.xlu1 }
 0x2cf   :  { %1973 = vmatmul.msk.f32.gmra.mxu3 %vm1063_vm0, %v1579_v43 }
 0x2d6   :  { %v1580_v24 = vpop.trf.xlu1 }
 0x2d7   :  { %1974 = vmatmul.msk.f32.gmra.mxu3 %vm1063_vm0, %v1580_v24 }
 0x2de   :  { %v1581_v14 = vpop.trf.xlu1 }
 0x2df   :  { %1975 = vmatmul.msk.f32.gmra.mxu3 %vm1063_vm0, %v1581_v14 }
 0x2e1   :  { %v319_v22 = vpop.xlane.xlu0 %318 }
 0x2e2   :  { %v320_v38 = vrot.slane %v319_v22, 4 }
 0x2e4   :  { %v321_v56 = vadd.f32 %v320_v38, %v319_v22 }
 0x2e6   :  { %v322_v57 = vrot.slane %v321_v56, 2 }
 0x2e8   :  { %v323_v58 = vadd.f32 %v322_v57, %v321_v56 }
 0x2ea   :  { %v324_v60 = vrot.slane %v323_v58, 1 }
 0x2ec   :  { %v325_v62 = vadd.f32 %v324_v60, %v323_v58 }
 0x2ee   :  { %1985 = vpush %v325_v62 }
 0x2f4   :  { %v2853_v47 = vpop.permute.xlu0 %1420 }
 0x2fc   :  { %v1507_v7 = vpop.permute.xlu0 %1506 }
 0x301   :  { %v1489_v21 = vpop.f32.mrf.mxu2 }
 0x302   :  { %v1509_v5 = vmul.f32 %v1507_v7, %v1489_v21  ;;  %v1504_v21 = vld [vmem:[#allocation2 + $0x58] sm:$0xff] }
 0x304   :  { %v1219_v29 = vpop.f32.mrf.mxu0  ;;  %v1513_v17 = vsub.f32 %v1501_v12, %v1509_v5 }
 0x305   :  { %v1241_v26 = vmul.f32 %v2786_v49, %v1219_v29 }
 0x306   :  { %v1519_v1 = vpop.permute.xlu1 %1518 }
 0x307   :  { %v1095_v4 = vpop.f32.mrf.mxu1  ;;  %v1245_v18 = vsub.f32 %v1231_v9, %v1241_v26  ;;  %v1521_v46 = vmul.f32 %v1519_v1, %v1513_v17 }
 0x308   :  { %v1111_v30 = vmul.f32 0.015625, %v1095_v4  ;;  %v1234_v4 = vld [vmem:[#allocation2 + $0x18] sm:$0xff] }
 0x309   :  { %v1492_v63 = vpop.f32.mrf.mxu2  ;;  %v1255_v44 = vmul.f32 %v2741_v31, %v1245_v18 }
 0x30a   :  { %v1510_v10 = vmul.f32 %v1507_v7, %v1492_v63  ;;  %v1115_v19 = vsub.f32 %v1107_v13, %v1111_v30 }
 0x30c   :  { %v1222_v2 = vpop.f32.mrf.mxu0  ;;  %v1514_v25 = vsub.f32 %v1502_v16, %v1510_v10  ;;  %v2861_v39 = vmul.f32 0.015873017, %v1115_v19 }
 0x30d   :  { %v1242_v59 = vmul.f32 %v2786_v49, %v1222_v2 }
 0x30e   :  { %v1522_v43 = vmul.f32 %v1519_v1, %v1514_v25  ;;  %v1525_v60 = vsub.f32 %v2861_v39, %v1521_v46  ;;  %v1259_v62 = vsub.f32 %v2861_v39, %v1255_v44 }
 0x30f   :  { %v1246_v28 = vsub.f32 %v1232_v23, %v1242_v59  ;;  %v1643_v46 = vpop.permute.xlu1 %1642 }
 0x310   :  { %v1529_v5 = vmul.f32 %v1525_v60, %v1525_v60  ;;  %v1263_v26 = vmul.f32 %v1259_v62, %v1259_v62  ;;  %v1638_v60 = vld [vmem:[#allocation2 + $0x68] sm:$0xff] }
 0x311   :  { %v1495_v3 = vpop.f32.mrf.mxu2  ;;  %v1256_v35 = vmul.f32 %v2741_v31, %v1246_v28 }
 0x312   :  { %v1511_v27 = vmul.f32 %v1507_v7, %v1495_v3  ;;  %v1533_v13 = vsel %vm43_vm2, %v1529_v5, 0.0 }
 0x314   :  { %v1225_v6 = vpop.f32.mrf.mxu0  ;;  %v1515_v36 = vsub.f32 %v1503_v32, %v1511_v27 }
 0x315   :  { %v1098_v53 = vpop.f32.mrf.mxu3  ;;  %v1243_v11 = vmul.f32 %v2786_v49, %v1225_v6 }
 0x316   :  { %v1112_v20 = vmul.f32 0.015625, %v1098_v53  ;;  %v1523_v55 = vmul.f32 %v1519_v1, %v1515_v36 }
 0x317   :  { %v1247_v37 = vsub.f32 %v1233_v33, %v1243_v11 }
 0x318   :  { %v1116_v15 = vsub.f32 %v1108_v40, %v1112_v20  ;;  %v1110_v20 = vld [vmem:[#allocation2 + $0xb8] sm:$0xff] }
 0x319   :  { %v1498_v51 = vpop.f32.mrf.mxu2  ;;  %v1257_v24 = vmul.f32 %v2741_v31, %v1247_v37 }
 0x31a   :  { %v2858_v34 = vmul.f32 0.015873017, %v1116_v15  ;;  %v1512_v14 = vmul.f32 %v1507_v7, %v1498_v51  ;;  %v1267_v15 = vsel %vm43_vm2, %v1263_v26, 0.0 }
 0x31c   :  { %v1228_v52 = vpop.f32.mrf.mxu0  ;;  %v1526_v57 = vsub.f32 %v2858_v34, %v1522_v43  ;;  %v1260_v58 = vsub.f32 %v2858_v34, %v1256_v35  ;;  %v1516_v2 = vsub.f32 %v1504_v21, %v1512_v14  ;;  %v2891_v43 = vpop.permute.xlu1 %1778 }
 0x31d   :  { %v1101_v41 = vpop.f32.mrf.mxu3  ;;  %v1244_v56 = vmul.f32 %v2786_v49, %v1228_v52 }
 0x31e   :  { %v1113_v50 = vmul.f32 0.015625, %v1101_v41  ;;  %v1530_v6 = vmul.f32 %v1526_v57, %v1526_v57  ;;  %v1264_v7 = vmul.f32 %v1260_v58, %v1260_v58  ;;  %v1524_v27 = vmul.f32 %v1519_v1, %v1516_v2  ;;  %v1637_v2 = vld [vmem:[#allocation2 + $0x60] sm:$0xff] }
 0x31f   :  { %s1986_s18 = spop %1985  ;;  %v1248_v53 = vsub.f32 %v1234_v4, %v1244_v56  ;;  %v1639_v4 = vld [vmem:[#allocation2 + $0x70] sm:$0xff] }
 0x320   :  { %v1117_v45 = vsub.f32 %v1109_v48, %v1113_v50  ;;  %v327_v54 = vstv %s1986_s18  ;;  %v1534_v12 = vsel %vm43_vm2, %v1530_v6, 0.0  ;;  %v1268_v9 = vsel %vm43_vm2, %v1264_v7, 0.0  ;;  %v1366_v6 = vld [vmem:[#allocation2 + $0x30] sm:$0xff]  ;;  %v1367_v7 = vld [vmem:[#allocation2 + $0x38] sm:$0xff] }
 0x321   :  { %v328_v22 = vadd.f32 %v327_v54, %v315_v42  ;;  %v1258_v40 = vmul.f32 %v2741_v31, %v1248_v53  ;;  %v1535_v23 = vadd.f32 %v1534_v12, %v1533_v13  ;;  %v1269_v31 = vadd.f32 %v1268_v9, %v1267_v15 }
 0x322   :  { %v2865_v38 = vmul.f32 0.015873017, %v1117_v45 }
 0x323   :  { %330 = vst.msk [vmem:[#allocation5] sm:$0x1] %vm71_vm1, %v328_v22 }
 0x324   :  { %v1527_v29 = vsub.f32 %v2865_v38, %v1523_v55  ;;  %v1261_v63 = vsub.f32 %v2865_v38, %v1257_v24  ;;  %v1352_v51 = vpop.f32.mrf.mxu1  ;;  %v1655_v26 = vpop.permute.xlu1 %1654 }
 0x325   :  { %v1104_v3 = vpop.f32.mrf.mxu3 }
 0x326   :  { %v1114_v49 = vmul.f32 0.015625, %v1104_v3  ;;  %v1531_v10 = vmul.f32 %v1527_v29, %v1527_v29  ;;  %v1265_v59 = vmul.f32 %v1261_v63, %v1261_v63  ;;  %v1364_v63 = vld [vmem:[#allocation2 + $0x20] sm:$0xff] }
 0x328   :  { %v1118_v30 = vsub.f32 %v1110_v20, %v1114_v49  ;;  %v1536_v18 = vsel %vm43_vm2, %v1531_v10, 0.0  ;;  %v1270_v16 = vsel %vm43_vm2, %v1265_v59, 0.0  ;;  %v1365_v49 = vld [vmem:[#allocation2 + $0x28] sm:$0xff] }
 0x329   :  { %v1537_v28 = vadd.f32 %v1536_v18, %v1535_v23  ;;  %v1271_v32 = vadd.f32 %v1270_v16, %v1269_v31 }
 0x32a   :  { %v2876_v11 = vmul.f32 0.015873017, %v1118_v30 }
 0x32c   :  { %v1528_v17 = vsub.f32 %v2876_v11, %v1524_v27  ;;  %v1262_v19 = vsub.f32 %v2876_v11, %v1258_v40  ;;  %v1355_v42 = vpop.f32.mrf.mxu1  ;;  %v1640_v27 = vld [vmem:[#allocation2 + $0x78] sm:$0xff] }
 0x32d   :  { %v1373_v56 = vmul.f32 %v2782_v8, %v1355_v42 }
 0x32e   :  { %v1532_v1 = vmul.f32 %v1528_v17, %v1528_v17  ;;  %v1266_v25 = vmul.f32 %v1262_v19, %v1262_v19 }
 0x32f   :  { %v1377_v30 = vsub.f32 %v1365_v49, %v1373_v56 }
 0x330   :  { %v1538_v33 = vsel %vm43_vm2, %v1532_v1, 0.0  ;;  %v1272_v36 = vsel %vm43_vm2, %v1266_v25, 0.0 }
 0x331   :  { %v1539_v37 = vadd.f32 %v1538_v33, %v1537_v28  ;;  %v1273_v41 = vadd.f32 %v1272_v36, %v1271_v32 }
 0x333   :  { %1540 = vadd.xlane.f32.xlu0 %v1539_v37  ;;  %1274 = vadd.xlane.f32.xlu2 %v1273_v41 }
 0x334   :  { %v1358_v48 = vpop.f32.mrf.mxu1 }
 0x335   :  { %v1374_v57 = vmul.f32 %v2782_v8, %v1358_v48 }
 0x337   :  { %v1378_v10 = vsub.f32 %v1366_v6, %v1374_v57 }
 0x33c   :  { %v1361_v35 = vpop.f32.mrf.mxu1 }
 0x33d   :  { %v1375_v58 = vmul.f32 %v2782_v8, %v1361_v35 }
 0x33f   :  { %v1379_v59 = vsub.f32 %v1367_v7, %v1375_v58 }
 0x34a   :  { %v1625_v50 = vpop.f32.mrf.mxu3 }
 0x34b   :  { %1381 = vperm.xlu2 %2121, %v2514_v0   ;;  %v1372_v0 = vmul.f32 %v2782_v8, %v1352_v51  ;;  %v1645_v14 = vmul.f32 %v1643_v46, %v1625_v50 }
 0x34d   :  { %v1376_v53 = vsub.f32 %v1364_v63, %v1372_v0  ;;  %v1649_v20 = vsub.f32 %v1637_v2, %v1645_v14 }
 0x34f   :  { %v1657_v19 = vmul.f32 %v1655_v26, %v1649_v20 }
 0x351   :  { %v1661_v50 = vsub.f32 %v2861_v39, %v1657_v19 }
 0x352   :  { %v1628_v44 = vpop.f32.mrf.mxu3 }
 0x353   :  { %1556 = vrot.lane.b32.xlu2 %v2789_v61, %s2196_s19  ;;  %v1646_v45 = vmul.f32 %v1643_v46, %v1628_v44 }
 0x355   :  { %v1650_v21 = vsub.f32 %v1638_v60, %v1646_v45 }
 0x357   :  { %v1658_v40 = vmul.f32 %v1655_v26, %v1650_v21 }
 0x359   :  { %v1662_v32 = vsub.f32 %v2858_v34, %v1658_v40 }
 0x35a   :  { %v1631_v52 = vpop.f32.mrf.mxu3 }
 0x35b   :  { %v1647_v22 = vmul.f32 %v1643_v46, %v1631_v52  ;;  %v1666_v35 = vmul.f32 %v1662_v32, %v1662_v32 }
 0x35d   :  { %v1651_v5 = vsub.f32 %v1639_v4, %v1647_v22  ;;  %v1670_v57 = vsel %vm43_vm2, %v1666_v35, 0.0  ;;  %v1776_v35 = vld [vmem:[#allocation2 + $0x98] sm:$0xff] }
 0x35f   :  { %v1659_v16 = vmul.f32 %v1655_v26, %v1651_v5 }
 0x361   :  { %v1663_v42 = vsub.f32 %v2865_v38, %v1659_v16 }
 0x362   :  { %v1634_v55 = vpop.f32.mrf.mxu3 }
 0x363   :  { %v1648_v29 = vmul.f32 %v1643_v46, %v1634_v55  ;;  %v1667_v14 = vmul.f32 %v1663_v42, %v1663_v42 }
 0x365   :  { %v1652_v12 = vsub.f32 %v1640_v27, %v1648_v29  ;;  %v1672_v60 = vsel %vm43_vm2, %v1667_v14, 0.0 }
 0x367   :  { %v1660_v36 = vmul.f32 %v1655_v26, %v1652_v12 }
 0x3a6   :  { %v1275_v54 = vpop.xlane.xlu2 %1274  ;;  %v1541_v2 = vpop.xlane.xlu0 %1540 }
 0x3a7   :  { %v1276_v24 = vrot.slane %v1275_v54, 4  ;;  %v1542_v4 = vrot.slane %v1541_v2, 4 }
 0x3a9   :  { %v1277_v62 = vadd.f32 %v1276_v24, %v1275_v54  ;;  %v1664_v54 = vsub.f32 %v2876_v11, %v1660_v36  ;;  %v1665_v24 = vmul.f32 %v1661_v50, %v1661_v50 }
 0x3ab   :  { %v1278_v3 = vrot.slane %v1277_v62, 2  ;;  %v1668_v56 = vmul.f32 %v1664_v54, %v1664_v54  ;;  %v1669_v58 = vsel %vm43_vm2, %v1665_v24, 0.0 }
 0x3ad   :  { %v1279_v8 = vadd.f32 %v1278_v3, %v1277_v62  ;;  %v1671_v62 = vadd.f32 %v1670_v57, %v1669_v58  ;;  %v1674_v21 = vsel %vm43_vm2, %v1668_v56, 0.0  ;;  %v1543_v3 = vadd.f32 %v1542_v4, %v1541_v2 }
 0x3ae   :  { %v1382_v9 = vpop.permute.xlu2 %1381 }
 0x3af   :  { %v1384_v13 = vmul.f32 %v1382_v9, %v1376_v53  ;;  %v1385_v15 = vmul.f32 %v1382_v9, %v1377_v30  ;;  %v1386_v17 = vmul.f32 %v1382_v9, %v1378_v10  ;;  %v1387_v18 = vmul.f32 %v1382_v9, %v1379_v59 }
 0x3b0   :  { %v1280_v23 = vrot.slane %v1279_v8, 1  ;;  %v1673_v29 = vadd.f32 %v1672_v60, %v1671_v62  ;;  %v1544_v53 = vrot.slane %v1543_v3, 2 }
 0x3b1   :  { %v1388_v31 = vsub.f32 %v2861_v39, %v1384_v13  ;;  %v1389_v1 = vsub.f32 %v2858_v34, %v1385_v15  ;;  %v1390_v25 = vsub.f32 %v2865_v38, %v1386_v17  ;;  %v1391_v28 = vsub.f32 %v2876_v11, %v1387_v18  ;;  %v1761_v18 = vpop.f32.mrf.mxu0 }
 0x3b2   :  { %v1281_v33 = vadd.f32 %v1280_v23, %v1279_v8  ;;  %v1675_v63 = vadd.f32 %v1674_v21, %v1673_v29  ;;  %v1545_v20 = vadd.f32 %v1544_v53, %v1543_v3 }
 0x3b3   :  { %v1392_v37 = vmul.f32 %v1388_v31, %v1388_v31  ;;  %v1393_v41 = vmul.f32 %v1389_v1, %v1389_v1  ;;  %v1394_v51 = vmul.f32 %v1390_v25, %v1390_v25  ;;  %v1395_v44 = vmul.f32 %v1391_v28, %v1391_v28 }
 0x3b4   :  { %1987 = vpush %v1281_v33  ;;  %v1546_v10 = vrot.slane %v1545_v20, 1 }
 0x3b5   :  { %v1396_v46 = vsel %vm43_vm2, %v1392_v37, 0.0  ;;  %v1397_v48 = vsel %vm43_vm2, %v1393_v41, 0.0  ;;  %v1399_v45 = vsel %vm43_vm2, %v1394_v51, 0.0  ;;  %v1401_v0 = vsel %vm43_vm2, %v1395_v44, 0.0  ;;  %v1774_v41 = vld [vmem:[#allocation2 + $0x88] sm:$0xff]  ;;  %v1775_v44 = vld [vmem:[#allocation2 + $0x90] sm:$0xff] }
 0x3b6   :  { %v1398_v52 = vadd.f32 %v1397_v48, %v1396_v46  ;;  %v1547_v12 = vadd.f32 %v1546_v10, %v1545_v20  ;;  %v1781_v51 = vmul.f32 %v2891_v43, %v1761_v18  ;;  %v1773_v48 = vld [vmem:[#allocation2 + $0x80] sm:$0xff]  ;;  %v1557_v10 = vpop.permute.xlu2 %1556 }
 0x3b8   :  { %v1400_v55 = vadd.f32 %v1399_v45, %v1398_v52  ;;  %v1791_v52 = vpop.permute.xlu1 %1790  ;;  %v1785_v45 = vsub.f32 %v1773_v48, %v1781_v51 }
 0x3b9   :  { %v1764_v19 = vpop.f32.mrf.mxu0 }
 0x3ba   :  { %v1402_v22 = vadd.f32 %v1401_v0, %v1400_v55  ;;  %v1782_v33 = vmul.f32 %v2891_v43, %v1764_v19  ;;  %v1793_v24 = vmul.f32 %v1791_v52, %v1785_v45 }
 0x3bc   :  { %1403 = vadd.xlane.f32.xlu0 %v1402_v22  ;;  %v1786_v50 = vsub.f32 %v1774_v41, %v1782_v33  ;;  %v1797_v56 = vsub.f32 %v2861_v39, %v1793_v24 }
 0x3be   :  { %v1794_v54 = vmul.f32 %v1791_v52, %v1786_v50  ;;  %v1801_v60 = vmul.f32 %v1797_v56, %v1797_v56  ;;  %v1847_v50 = vld [vmem:[#allocation5] sm:$0x1] }
 0x3c0   :  { %v1798_v14 = vsub.f32 %v2858_v34, %v1794_v54 }
 0x3c1   :  { %v1767_v25 = vpop.f32.mrf.mxu0 }
 0x3c2   :  { %v1783_v37 = vmul.f32 %v2891_v43, %v1767_v25  ;;  %v1802_v58 = vmul.f32 %v1798_v14, %v1798_v14 }
 0x3c4   :  { %1676 = vadd.xlane.f32.xlu0 %v1675_v63  ;;  %v1787_v46 = vsub.f32 %v1775_v44, %v1783_v37  ;;  %v1806_v29 = vsel %vm43_vm2, %v1802_v58, 0.0  ;;  %v1805_v63 = vsel %vm43_vm2, %v1801_v60, 0.0 }
 0x3c5   :  { %v1807_v4 = vadd.f32 %v1806_v29, %v1805_v63 }
 0x3c6   :  { %v1795_v0 = vmul.f32 %v1791_v52, %v1787_v46  ;;  %v1848_v46 = vmul.f32 0.015625, %v1847_v50 }
 0x3c8   :  { %v1799_v57 = vsub.f32 %v2865_v38, %v1795_v0 }
 0x3c9   :  { %v1770_v36 = vpop.f32.mrf.mxu0 }
 0x3ca   :  { %v1784_v42 = vmul.f32 %v2891_v43, %v1770_v36  ;;  %v1803_v62 = vmul.f32 %v1799_v57, %v1799_v57 }
 0x3cc   :  { %v1788_v55 = vsub.f32 %v1776_v35, %v1784_v42  ;;  %v1808_v2 = vsel %vm43_vm2, %v1803_v62, 0.0 }
 0x3cd   :  { %v1809_v3 = vadd.f32 %v1808_v2, %v1807_v4 }
 0x3ce   :  { %v1796_v22 = vmul.f32 %v1791_v52, %v1788_v55 }
 0x3d0   :  { %v1800_v43 = vsub.f32 %v2876_v11, %v1796_v22 }
 0x3d2   :  { %v1804_v21 = vmul.f32 %v1800_v43, %v1800_v43 }
 0x3d4   :  { %v1810_v34 = vsel %vm43_vm2, %v1804_v21, 0.0 }
 0x3d5   :  { %v1811_v53 = vadd.f32 %v1810_v34, %v1809_v3 }
 0x3e5   :  { %s2913_s0 = spop %1987 }
 0x42f   :  { %v1404_v49 = vpop.xlane.xlu0 %1403 }
 0x430   :  { %v1405_v6 = vrot.slane %v1404_v49, 4 }
 0x432   :  { %v1406_v7 = vadd.f32 %v1405_v6, %v1404_v49 }
 0x434   :  { %v1407_v5 = vrot.slane %v1406_v7, 2 }
 0x436   :  { %v1408_v26 = vadd.f32 %v1407_v5, %v1406_v7 }
 0x437   :  { %v1677_v30 = vpop.xlane.xlu0 %1676 }
 0x438   :  { %v1678_v59 = vrot.slane %v1677_v30, 4  ;;  %v1409_v27 = vrot.slane %v1408_v26, 1 }
 0x43a   :  { %v1679_v8 = vadd.f32 %v1678_v59, %v1677_v30  ;;  %v1410_v40 = vadd.f32 %v1409_v27, %v1408_v26 }
 0x43c   :  { %v1680_v9 = vrot.slane %v1679_v8, 2  ;;  %1989 = vpush %v1410_v40  ;;  %v1423_v40 = vadd.f32 %v2789_v61, %v2853_v47 }
 0x43d   :  { %1991 = vpush %v1547_v12 }
 0x43e   :  { %v1681_v13 = vadd.f32 %v1680_v9, %v1679_v8  ;;  %v1559_v9 = vadd.f32 %v1557_v10, %v1423_v40 }
 0x440   :  { %v1682_v15 = vrot.slane %v1681_v13, 1 }
 0x442   :  { %v1683_v17 = vadd.f32 %v1682_v15, %v1681_v13 }
 0x444   :  { %1993 = vpush %v1683_v17  ;;  %v1283_v17 = vstv %s2913_s0 }
 0x46d   :  { %s1990_s20 = spop %1989 }
 0x46e   :  { %v1412_v16 = vstv %s1990_s20  ;;  %s1992_s3 = spop %1991 }
 0x46f   :  { %v1413_v23 = vmul.f32 %v2789_v61, %v1412_v16  ;;  %v1549_v31 = vstv %s1992_s3  ;;  %v1284_v16 = vmul.f32 %v2789_v61, %v1283_v17 }
 0x470   :  { %v1550_v1 = vmul.f32 %v2789_v61, %v1549_v31 }
 0x471   :  { %1415 = vrot.lane.b32.xlu0 %v1413_v23, %s2195_s7 }
 0x472   :  { %1552 = vrot.lane.b32.xlu1 %v1550_v1, %s2196_s19 }
 0x475   :  { %s1994_s21 = spop %1993 }
 0x476   :  { %v1685_v28 = vstv %s1994_s21 }
 0x477   :  { %v1686_v32 = vmul.f32 %v2789_v61, %v1685_v28 }
 0x479   :  { %1692 = vrot.lane.b32.xlu0 %v2789_v61, %s2197_s2  ;;  %1688 = vrot.lane.b32.xlu2 %v1686_v32, %s2197_s2 }
 0x49c   :  { %1812 = vadd.xlane.f32.xlu1 %v1811_v53 }
 0x4d3   :  { %v1689_v59 = vpop.permute.xlu2 %1688 }
 0x4e3   :  { %v1416_v27 = vpop.permute.xlu0 %1415 }
 0x4e4   :  { %v1553_v39 = vpop.permute.xlu1 %1552  ;;  %v1418_v23 = vadd.f32 %v1416_v27, %v1284_v16 }
 0x4e6   :  { %v1555_v31 = vadd.f32 %v1553_v39, %v1418_v23 }
 0x4e8   :  { %v1691_v28 = vadd.f32 %v1689_v59, %v1555_v31 }
 0x4eb   :  { %v1693_v12 = vpop.permute.xlu0 %1692 }
 0x4ec   :  { %v1695_v13 = vadd.f32 %v1693_v12, %v1559_v9 }
 0x50f   :  { %v1813_v38 = vpop.xlane.xlu1 %1812 }
 0x510   :  { %v1814_v49 = vrot.slane %v1813_v38, 4 }
 0x512   :  { %v1815_v6 = vadd.f32 %v1814_v49, %v1813_v38 }
 0x514   :  { %v1816_v11 = vrot.slane %v1815_v6, 2 }
 0x516   :  { %v1817_v7 = vadd.f32 %v1816_v11, %v1815_v6 }
 0x518   :  { %v1818_v20 = vrot.slane %v1817_v7, 1 }
 0x51a   :  { %v1819_v5 = vadd.f32 %v1818_v20, %v1817_v7 }
 0x51c   :  { %1995 = vpush %v1819_v5 }
 0x54d   :  { %s1996_s25 = spop %1995 }
 0x54e   :  { %v1821_v26 = vstv %s1996_s25 }
 0x54f   :  { %v1822_v30 = vmul.f32 %v2789_v61, %v1821_v26 }
 0x551   :  { %1824 = vrot.lane.b32.xlu2 %v1822_v30, %s2199_s26 }
 0x559   :  { %1828 = vrot.lane.b32.xlu2 %v2789_v61, %s2199_s26 }
 0x5ab   :  { %v1825_v8 = vpop.permute.xlu2 %1824 }
 0x5ac   :  { %v1827_v36 = vadd.f32 %v1825_v8, %v1691_v28 }
 0x5ae   :  { %v1849_v42 = vmul.f32 0.00024414063, %v1827_v36 }
 0x5b3   :  { %v1829_v15 = vpop.permute.xlu2 %1828 }
 0x5b4   :  { %v1831_v18 = vadd.f32 %v1829_v15, %v1695_v13 }
 0x5b6   :  { %v1832_v19 = vmax.f32 %v1831_v18, 1.0 }
 0x5b8   :  { %2135 = vrcp.f32 %v1832_v19  ;;  %v1844_v33 = vand.u32 2147483648, %v1832_v19  ;;  %v1842_v47 = vand.u32 2147483647, %v1832_v19  ;;  %vm1838_vm3 = vweird.f32 %v1832_v19 }
 0x5ba   :  { %v1845_v51 = vor.u32 1.1754944e-38, %v1844_v33  ;;  %vm1843_vm4 = vcmp.eq.f32.partialorder %v1842_v47, 8.507059e+37 }
 0x5be   :  { %v2136_v1 = vpop.eup %2135 }
 0x5bf   :  { %v1834_v25 = vmul.f32 %v2136_v1, %v1832_v19  ;;  %vm1839_vm2 = vweird.f32 %v2136_v1 }
 0x5c0   :  { %vm1840_vm6 = vmor %vm1838_vm3, %vm1839_vm2 }
 0x5c1   :  { %v1835_v32 = vsub.f32 1.0, %v1834_v25 }
 0x5c3   :  { %v1836_v37 = vmul.f32 %v2136_v1, %v1835_v32 }
 0x5c5   :  { %v1837_v41 = vadd.f32 %v2136_v1, %v1836_v37 }
 0x5c7   :  { %v1841_v44 = vsel %vm1840_vm6, %v2136_v1, %v1837_v41 }
 0x5c8   :  { %v1846_v61 = vsel %vm1843_vm4, %v1845_v51, %v1841_v44 }
 0x5c9   :  { %v1850_v48 = vmul.f32 %v1849_v42, %v1846_v61 }
 0x5cb   :  { %v1851_v52 = vadd.f32 %v1850_v48, %v1848_v46 }
 0x5cd   :  { %1852 = vst.msk [vmem:[#allocation9] sm:$0x1] %vm71_vm1, %v1851_v52 }
 0x5ce   :  { %1876 = dma.vmem_to_hbm [thread:$0]  %s1872_s27, 16, %s1874_s1, [#allocation10]  }
 0x5cf   :  { %2185 = dma.done.wait [#allocation8], 16  }
 0x5d0   :  { %2186 = vsyncadd [#allocation8], 4294967280 }
 0x5d1   :  { %2187 = dma.done.wait [#allocation10], 16  }
 0x5d2   :  { %2188 = vsyncadd [#allocation10], 4294967280 }
 0x5d3   :  { %1887 = vsyncpa [#allocation8], 1 }
 0x5d4   :  { %1888 = vsyncpa [#allocation10], 1 }

</bundles_post_ra>
